<compile_context>
chip_gen: v6e
topology: v6e:2x2x1
jax: 0.10.0
libtpu: 0.0.40
codegen_flags: <defaults>
</compile_context>

<pallas_src>
import functools

import jax
import jax.numpy as jnp
import numpy as np
from jax.experimental import pallas as pl
from jax.experimental.pallas import tpu as pltpu


# ---------------------------------------------------------------------------
# Model config
# ---------------------------------------------------------------------------
PATCH = 8
EMBED_DIM = 32
NUM_HEADS = 2
DEPTH = 2
MLP_DIM = 4 * EMBED_DIM
LN_EPS = 1e-6   # synthetic ViT-style trunk; PyTorch nn.LayerNorm default is 1e-5.


# ---------------------------------------------------------------------------
# Fused kernel: patch-embed -> mask/pos -> DEPTH x transformer block
#               -> final LN -> linear pixel-decoder head
# ---------------------------------------------------------------------------
def _omnimae_kernel(patches_ref, mask_ref, pos_ref, bias_ref, patch_w_ref,
                    qkv_w_ref, proj_w_ref, fc1_w_ref, fc2_w_ref, head_w_ref,
                    vec_ref, qkvb_ref, fc1b_ref, headb_ref, out_ref,
                    *, depth, num_heads):
    f32, bf16 = jnp.float32, jnp.bfloat16
    D = patch_w_ref.shape[1]

    def vrow(r):                       # packed (R, D) param rows, static index
        return vec_ref[r:r + 1, :]     # (1, D) f32

    def ln(x, g, b):
        # Elementwise/EUP math kept in f32 (v5e has no bf16 VPU/EUP).
        mu = jnp.mean(x, axis=-1, keepdims=True)
        xc = x - mu
        var = jnp.mean(xc * xc, axis=-1, keepdims=True)
        return xc * jax.lax.rsqrt(var + LN_EPS) * g + b

    # --- patch embed + mask-token replace + pos embed (all fused) -----------
    # patches/weights already bf16 in HBM -> no casts before the MXU.
    tokens = jnp.dot(patches_ref[...], patch_w_ref[...],
                     preferred_element_type=f32) + vrow(0)            # (M, D)
    tokens = jnp.where(mask_ref[...] > 0.5, vrow(1), tokens)          # mask tok
    h = tokens + pos_ref[...]

    attn_bias = bias_ref[...]                                         # (M, M)

    # --- transformer blocks (statically unrolled) ---------------------------
    for d in range(depth):
        base = 4 + 6 * d
        ln1_g, ln1_b = vrow(base), vrow(base + 1)
        proj_b = vrow(base + 2)
        ln2_g, ln2_b = vrow(base + 3), vrow(base + 4)
        fc2_b = vrow(base + 5)

        # self-attention (Q pre-scaled by 1/sqrt(Dh) via folded host weights)
        y16 = ln(h, ln1_g, ln1_b).astype(bf16)       # one cast, reused 4x
        acc = jnp.zeros_like(h)                      # (M, D) f32
        for hd in range(num_heads):
            iq = (d * 3 + 0) * num_heads + hd
            ik = (d * 3 + 1) * num_heads + hd
            iv = (d * 3 + 2) * num_heads + hd
            q = jnp.dot(y16, qkv_w_ref[iq], preferred_element_type=f32) \
                + qkvb_ref[iq:iq + 1, :]                              # (M, Dh)
            k = jnp.dot(y16, qkv_w_ref[ik], preferred_element_type=f32) \
                + qkvb_ref[ik:ik + 1, :]
            v = jnp.dot(y16, qkv_w_ref[iv], preferred_element_type=f32) \
                + qkvb_ref[iv:iv + 1, :]
            # scores: contract last dims directly (no explicit k transpose)
            s = jax.lax.dot_general(q.astype(bf16), k.astype(bf16),
                                    (((1,), (1,)), ((), ())),
                                    preferred_element_type=f32)       # (M, M)
            s = s + attn_bias                        # block-diag over batch
            s = s - jnp.max(s, axis=-1, keepdims=True)
            p = jnp.exp(s)
            p = p * pl.reciprocal(jnp.sum(p, axis=-1, keepdims=True),
                                  approx=True)
            o = jnp.dot(p.astype(bf16), v.astype(bf16),
                        preferred_element_type=f32)                   # (M, Dh)
            # accumulate directly against this head's row-block of proj_w
            acc = acc + jnp.dot(o.astype(bf16), proj_w_ref[d * num_heads + hd],
                                preferred_element_type=f32)           # (M, D)
        h = h + acc + proj_b

        # MLP
        y16 = ln(h, ln2_g, ln2_b).astype(bf16)
        z = jnp.dot(y16, fc1_w_ref[d], preferred_element_type=f32) \
            + fc1b_ref[d:d + 1, :]
        # TODO(synk): PyTorch nn.GELU defaults to exact erf; tanh approx here.
        z = jax.nn.gelu(z, approximate=True)
        h = h + jnp.dot(z.astype(bf16), fc2_w_ref[d],
                        preferred_element_type=f32) + fc2_b

    # --- final LN + linear head (lane-dense bf16 output) --------------------
    h = ln(h, vrow(2), vrow(3))
    out = jnp.dot(h.astype(bf16), head_w_ref[...],
                  preferred_element_type=f32) + headb_ref[...]
    out_ref[...] = out.astype(out_ref.dtype)


# ---------------------------------------------------------------------------
# Parameters (f32 "checkpoint"; bf16 packing happens at trace time)
# ---------------------------------------------------------------------------
def init_params(key, in_chans, num_patches):
    patch_dim = in_chans * PATCH * PATCH
    ks = jax.random.split(key, 8 + DEPTH)
    p = {
        "patch_w": 0.02 * jax.random.normal(ks[0], (patch_dim, EMBED_DIM), jnp.float32),
        "patch_b": jnp.zeros((EMBED_DIM,), jnp.float32),
        "pos_embed": 0.02 * jax.random.normal(ks[1], (num_patches, EMBED_DIM), jnp.float32),
        "mask_token": 0.02 * jax.random.normal(ks[2], (EMBED_DIM,), jnp.float32),
        "lnf_g": jnp.ones((EMBED_DIM,), jnp.float32),
        "lnf_b": jnp.zeros((EMBED_DIM,), jnp.float32),
        "head_w": 0.02 * jax.random.normal(ks[3], (EMBED_DIM, patch_dim), jnp.float32),
        "head_b": jnp.zeros((patch_dim,), jnp.float32),
        "blocks": [],
    }
    for d in range(DEPTH):
        bk = jax.random.split(ks[8 + d], 4)
        p["blocks"].append({
            "ln1_g": jnp.ones((EMBED_DIM,), jnp.float32),
            "ln1_b": jnp.zeros((EMBED_DIM,), jnp.float32),
            "qkv_w": 0.02 * jax.random.normal(bk[0], (EMBED_DIM, 3 * EMBED_DIM), jnp.float32),
            "qkv_b": jnp.zeros((3 * EMBED_DIM,), jnp.float32),
            "proj_w": 0.02 * jax.random.normal(bk[1], (EMBED_DIM, EMBED_DIM), jnp.float32),
            "proj_b": jnp.zeros((EMBED_DIM,), jnp.float32),
            "ln2_g": jnp.ones((EMBED_DIM,), jnp.float32),
            "ln2_b": jnp.zeros((EMBED_DIM,), jnp.float32),
            "fc1_w": 0.02 * jax.random.normal(bk[2], (EMBED_DIM, MLP_DIM), jnp.float32),
            "fc1_b": jnp.zeros((MLP_DIM,), jnp.float32),
            "fc2_w": 0.02 * jax.random.normal(bk[3], (MLP_DIM, EMBED_DIM), jnp.float32),
            "fc2_b": jnp.zeros((EMBED_DIM,), jnp.float32),
        })
    return p


# ---------------------------------------------------------------------------
# Forward pass (same semantics as OmniMAE.forward: head(trunk(x, mask)))
# ---------------------------------------------------------------------------
def _rep(shape):
    """BlockSpec for an array replicated across the grid axis."""
    zeros = (0,) * len(shape)
    return pl.BlockSpec(tuple(shape), lambda i, _z=zeros: _z)


def omnimae_forward(params, imgOrVideo, mask=None):
    B, C, H, W = imgOrVideo.shape
    nH, nW = H // PATCH, W // PATCH
    N = nH * nW
    P = C * PATCH * PATCH
    D = EMBED_DIM
    Dh = D // NUM_HEADS
    scale = Dh ** -0.5
    bf = jnp.bfloat16

    # Fold batch into the token (sublane) dimension: G batch elems per step so
    # G*N tokens fill the 8-sublane vreg dim; remaining batch goes to the grid.
    G = max(1, min(B, max(1, 8 // N)))
    while B % G:
        G -= 1
    M = G * N
    grid = (B // G,)

    # Patchify (layout-only glue): NCHW -> (B*N, C*ph*pw), bf16 for the MXU.
    patches = imgOrVideo.reshape(B, C, nH, PATCH, nW, PATCH)
    patches = patches.transpose(0, 2, 4, 1, 3, 5).reshape(B * N, P).astype(bf)

    if mask is None:   # no-mask trunk branch: all-zero mask leaves tokens intact
        mask_f = jnp.zeros((B * N, 1), jnp.float32)
    else:
        mask_f = mask.astype(jnp.float32).reshape(B * N, 1)

    pos = jnp.tile(params["pos_embed"], (G, 1))                       # (M, D) f32

    # Block-diagonal additive attention bias (tokens attend only within their
    # own batch element); host-computed constant.
    tok_b = np.repeat(np.arange(G), N)
    bias = jnp.asarray(
        np.where(tok_b[:, None] == tok_b[None, :], 0.0, -1e30), jnp.float32)

    # --- host-side packing (trace time; exact) -------------------------------
    qkv_w_rows, qkv_b_rows, proj_w_rows = [], [], []
    fc1_w, fc2_w, fc1_b = [], [], []
    vec_rows = [params["patch_b"], params["mask_token"],
                params["lnf_g"], params["lnf_b"]]
    for blk in params["blocks"]:
        for wi in range(3):                            # q, k, v
            wpart = blk["qkv_w"][:, wi * D:(wi + 1) * D]
            bpart = blk["qkv_b"][wi * D:(wi + 1) * D]
            if wi == 0:                                # fold 1/sqrt(Dh) into Q
                wpart = wpart * scale
                bpart = bpart * scale
            for hd in range(NUM_HEADS):
                qkv_w_rows.append(wpart[:, hd * Dh:(hd + 1) * Dh])    # (D, Dh)
                qkv_b_rows.append(bpart[hd * Dh:(hd + 1) * Dh])       # (Dh,)
        for hd in range(NUM_HEADS):
            proj_w_rows.append(blk["proj_w"][hd * Dh:(hd + 1) * Dh, :])  # (Dh, D)
        fc1_w.append(blk["fc1_w"])
        fc2_w.append(blk["fc2_w"])
        fc1_b.append(blk["fc1_b"])
        vec_rows += [blk["ln1_g"], blk["ln1_b"], blk["proj_b"],
                     blk["ln2_g"], blk["ln2_b"], blk["fc2_b"]]

    qkv_w = jnp.stack(qkv_w_rows, 0).astype(bf)        # (DEPTH*3*H, D, Dh)
    proj_w = jnp.stack(proj_w_rows, 0).astype(bf)      # (DEPTH*H, Dh, D)
    fc1_w = jnp.stack(fc1_w, 0).astype(bf)             # (DEPTH, D, MLP)
    fc2_w = jnp.stack(fc2_w, 0).astype(bf)             # (DEPTH, MLP, D)
    patch_w = params["patch_w"].astype(bf)             # (P, D)
    head_w = params["head_w"].astype(bf)               # (D, P)
    vec_d = jnp.stack(vec_rows, 0)                     # (4+6*DEPTH, D) f32
    qkv_b = jnp.stack(qkv_b_rows, 0)                   # (DEPTH*3*H, Dh) f32
    fc1_b = jnp.stack(fc1_b, 0)                        # (DEPTH, MLP) f32
    head_b = params["head_b"].reshape(1, P)            # (1, P) f32

    args = [patches, mask_f, pos, bias, patch_w,
            qkv_w, proj_w, fc1_w, fc2_w, head_w,
            vec_d, qkv_b, fc1_b, head_b]
    in_specs = [
        pl.BlockSpec((M, P), lambda i: (i, 0)),
        pl.BlockSpec((M, 1), lambda i: (i, 0)),
        _rep(pos.shape), _rep(bias.shape), _rep(patch_w.shape),
        _rep(qkv_w.shape), _rep(proj_w.shape), _rep(fc1_w.shape),
        _rep(fc2_w.shape), _rep(head_w.shape),
        _rep(vec_d.shape), _rep(qkv_b.shape), _rep(fc1_b.shape),
        _rep(head_b.shape),
    ]

    out = pl.pallas_call(
        functools.partial(_omnimae_kernel, depth=DEPTH, num_heads=NUM_HEADS),
        grid=grid,
        in_specs=in_specs,
        out_specs=pl.BlockSpec((M, P), lambda i: (i, 0)),
        out_shape=jax.ShapeDtypeStruct((B * N, P), jnp.bfloat16),
        compiler_params=pltpu.CompilerParams(
            dimension_semantics=("parallel",)),        # batch steps -> both TCs
    )(*args)
    return out.reshape(B, N, P)


# ---------------------------------------------------------------------------
# Pure-JAX reference (f32 everywhere) for a loose correctness check
# ---------------------------------------------------------------------------
def _reference_forward(params, x, mask=None):
    B, C, H, W = x.shape
    nH, nW = H // PATCH, W // PATCH
    N = nH * nW
    P = C * PATCH * PATCH
    D = EMBED_DIM
    Dh = D // NUM_HEADS
    scale = 1.0 / (Dh ** 0.5)

    patches = x.reshape(B, C, nH, PATCH, nW, PATCH)
    patches = patches.transpose(0, 2, 4, 1, 3, 5).reshape(B, N, P)
    tokens = patches @ params["patch_w"] + params["patch_b"]
    if mask is not None:
        tokens = jnp.where(mask[..., None], params["mask_token"][None, None, :], tokens)
    h = tokens + params["pos_embed"][None]

    def ln(v, g, b):
        mu = jnp.mean(v, -1, keepdims=True)
        var = jnp.mean((v - mu) ** 2, -1, keepdims=True)
        return (v - mu) * jax.lax.rsqrt(var + LN_EPS) * g + b

    for blk in params["blocks"]:
        y = ln(h, blk["ln1_g"], blk["ln1_b"])
        qkv = y @ blk["qkv_w"] + blk["qkv_b"]
        qkv = qkv.reshape(B, N, 3, NUM_HEADS, Dh).transpose(2, 0, 3, 1, 4)
        q, k, v = qkv[0] * scale, qkv[1], qkv[2]
        s = jnp.einsum("bhqd,bhkd->bhqk", q, k)
        p = jax.nn.softmax(s, axis=-1)
        a = jnp.einsum("bhqk,bhkd->bhqd", p, v).transpose(0, 2, 1, 3).reshape(B, N, D)
        h = h + a @ blk["proj_w"] + blk["proj_b"]
        y = ln(h, blk["ln2_g"], blk["ln2_b"])
        y = jax.nn.gelu(y @ blk["fc1_w"] + blk["fc1_b"], approximate=True)
        h = h + y @ blk["fc2_w"] + blk["fc2_b"]

    h = ln(h, params["lnf_g"], params["lnf_b"])
    return h @ params["head_w"] + params["head_b"]


# ---------------------------------------------------------------------------
if __name__ == "__main__":
    key = jax.random.PRNGKey(0)
    k_x, k_p, k_m = jax.random.split(key, 3)

    B, C, H, W = 2, 4, 16, 16
    N = (H // PATCH) * (W // PATCH)

    x = jax.random.normal(k_x, (B, C, H, W), jnp.float32)
    params = init_params(k_p, C, N)

    fwd = jax.jit(omnimae_forward)

    # mask=None branch
    out_nomask = jax.block_until_ready(fwd(params, x, mask=None))
    assert out_nomask.shape == (B, N, C * PATCH * PATCH)

    # mask branch (boolean per-patch mask)
    mask = jax.random.bernoulli(k_m, 0.5, (B, N))
    out_mask = jax.block_until_ready(fwd(params, x, mask=mask))
    assert out_mask.shape == (B, N, C * PATCH * PATCH)

    # Loose numerical check vs. f32 pure-JAX reference (bf16 weights/patches,
    # bf16 MXU inputs, bf16 output, approx reciprocal -> generous tolerances).
    ref_nomask = _reference_forward(params, x, mask=None)
    ref_mask = _reference_forward(params, x, mask=mask)
    got_nomask = np.asarray(out_nomask.astype(jnp.float32))
    got_mask = np.asarray(out_mask.astype(jnp.float32))
    assert np.allclose(got_nomask, np.asarray(ref_nomask), atol=5e-2, rtol=5e-2)
    assert np.allclose(got_mask, np.asarray(ref_mask), atol=5e-2, rtol=5e-2)
    assert np.all(np.isfinite(got_nomask)) and np.all(np.isfinite(got_mask))

    print("KERNEL_OK")
</pallas_src>

<mosaic_0001>
module attributes {stable_mosaic.version = 11 : i64} {
  func.func @_omnimae_kernel(%arg0: i32, %arg1: memref<8x256xbf16, #tpu.memory_space<vmem>>, %arg2: memref<8x1xf32, #tpu.memory_space<vmem>>, %arg3: memref<8x32xf32, #tpu.memory_space<vmem>>, %arg4: memref<8x8xf32, #tpu.memory_space<vmem>>, %arg5: memref<256x32xbf16, #tpu.memory_space<vmem>>, %arg6: memref<12x32x16xbf16, #tpu.memory_space<vmem>>, %arg7: memref<4x16x32xbf16, #tpu.memory_space<vmem>>, %arg8: memref<2x32x128xbf16, #tpu.memory_space<vmem>>, %arg9: memref<2x128x32xbf16, #tpu.memory_space<vmem>>, %arg10: memref<32x256xbf16, #tpu.memory_space<vmem>>, %arg11: memref<16x32xf32, #tpu.memory_space<vmem>>, %arg12: memref<12x16xf32, #tpu.memory_space<vmem>>, %arg13: memref<2x128xf32, #tpu.memory_space<vmem>>, %arg14: memref<1x256xf32, #tpu.memory_space<vmem>>, %arg15: memref<8x256xbf16, #tpu.memory_space<vmem>>) attributes {dimension_semantics = [#tpu.dimension_semantics<parallel>], iteration_bounds = array<i64: 1>, scalar_prefetch = 0 : i64, scratch_operands = 0 : i64, tpu.core_type = #tpu.core_type<tc>, window_params = [{transform_indices = @transform_0, window_bounds = array<i64: 8, 256>}, {transform_indices = @transform_1, window_bounds = array<i64: 8, 1>}, {pipeline_mode = #tpu.pipeline_mode<synchronous>, transform_indices = @transform_2, window_bounds = array<i64: 8, 32>}, {pipeline_mode = #tpu.pipeline_mode<synchronous>, transform_indices = @transform_3, window_bounds = array<i64: 8, 8>}, {pipeline_mode = #tpu.pipeline_mode<synchronous>, transform_indices = @transform_4, window_bounds = array<i64: 256, 32>}, {pipeline_mode = #tpu.pipeline_mode<synchronous>, transform_indices = @transform_5, window_bounds = array<i64: 12, 32, 16>}, {pipeline_mode = #tpu.pipeline_mode<synchronous>, transform_indices = @transform_6, window_bounds = array<i64: 4, 16, 32>}, {pipeline_mode = #tpu.pipeline_mode<synchronous>, transform_indices = @transform_7, window_bounds = array<i64: 2, 32, 128>}, {pipeline_mode = #tpu.pipeline_mode<synchronous>, transform_indices = @transform_8, window_bounds = array<i64: 2, 128, 32>}, {pipeline_mode = #tpu.pipeline_mode<synchronous>, transform_indices = @transform_9, window_bounds = array<i64: 32, 256>}, {pipeline_mode = #tpu.pipeline_mode<synchronous>, transform_indices = @transform_10, window_bounds = array<i64: 16, 32>}, {pipeline_mode = #tpu.pipeline_mode<synchronous>, transform_indices = @transform_11, window_bounds = array<i64: 12, 16>}, {pipeline_mode = #tpu.pipeline_mode<synchronous>, transform_indices = @transform_12, window_bounds = array<i64: 2, 128>}, {pipeline_mode = #tpu.pipeline_mode<synchronous>, transform_indices = @transform_13, window_bounds = array<i64: 1, 256>}, {transform_indices = @transform_14, window_bounds = array<i64: 8, 256>}]} {
    %c0 = arith.constant 0 : index
    %c0_0 = arith.constant 0 : index
    %0 = vector.load %arg1[%c0, %c0_0] : memref<8x256xbf16, #tpu.memory_space<vmem>>, vector<8x256xbf16>
    %c0_1 = arith.constant 0 : index
    %c0_2 = arith.constant 0 : index
    %1 = vector.load %arg5[%c0_1, %c0_2] : memref<256x32xbf16, #tpu.memory_space<vmem>>, vector<256x32xbf16>
    %cst = arith.constant dense<0.000000e+00> : vector<8x32xf32>
    %2 = tpu.matmul %0, %1, %cst {dimension_numbers = #tpu.dot_dimension_numbers<[1], [0], [0], [1], [0, 0, 1, 1], [], []>} : vector<8x256xbf16>, vector<256x32xbf16>, vector<8x32xf32> -> vector<8x32xf32>
    %c0_3 = arith.constant 0 : index
    %c0_4 = arith.constant 0 : index
    %3 = vector.load %arg11[%c0_3, %c0_4] : memref<16x32xf32, #tpu.memory_space<vmem>>, vector<1x32xf32>
    %4 = vector.broadcast %3 : vector<1x32xf32> to vector<8x32xf32>
    %5 = arith.addf %2, %4 : vector<8x32xf32>
    %c0_5 = arith.constant 0 : index
    %c0_6 = arith.constant 0 : index
    %6 = vector.load %arg2[%c0_5, %c0_6] : memref<8x1xf32, #tpu.memory_space<vmem>>, vector<8x1xf32>
    %cst_7 = arith.constant 5.000000e-01 : f32
    %7 = vector.broadcast %cst_7 : f32 to vector<8x1xf32>
    %8 = arith.cmpf ogt, %6, %7 : vector<8x1xf32>
    %c1 = arith.constant 1 : index
    %c0_8 = arith.constant 0 : index
    %9 = vector.load %arg11[%c1, %c0_8] : memref<16x32xf32, #tpu.memory_space<vmem>>, vector<1x32xf32>
    %10 = vector.shape_cast %8 : vector<8x1xi1> to vector<8x1xi1>
    %11 = vector.broadcast %10 : vector<8x1xi1> to vector<8x32xi1>
    %12 = vector.shape_cast %9 : vector<1x32xf32> to vector<1x32xf32>
    %13 = vector.broadcast %12 : vector<1x32xf32> to vector<8x32xf32>
    %14 = arith.select %11, %13, %5 : vector<8x32xi1>, vector<8x32xf32>
    %c0_9 = arith.constant 0 : index
    %c0_10 = arith.constant 0 : index
    %15 = vector.load %arg3[%c0_9, %c0_10] : memref<8x32xf32, #tpu.memory_space<vmem>>, vector<8x32xf32>
    %16 = arith.addf %14, %15 : vector<8x32xf32>
    %c0_11 = arith.constant 0 : index
    %c0_12 = arith.constant 0 : index
    %17 = vector.load %arg4[%c0_11, %c0_12] : memref<8x8xf32, #tpu.memory_space<vmem>>, vector<8x8xf32>
    %c4 = arith.constant 4 : index
    %c0_13 = arith.constant 0 : index
    %18 = vector.load %arg11[%c4, %c0_13] : memref<16x32xf32, #tpu.memory_space<vmem>>, vector<1x32xf32>
    %c5 = arith.constant 5 : index
    %c0_14 = arith.constant 0 : index
    %19 = vector.load %arg11[%c5, %c0_14] : memref<16x32xf32, #tpu.memory_space<vmem>>, vector<1x32xf32>
    %c6 = arith.constant 6 : index
    %c0_15 = arith.constant 0 : index
    %20 = vector.load %arg11[%c6, %c0_15] : memref<16x32xf32, #tpu.memory_space<vmem>>, vector<1x32xf32>
    %c7 = arith.constant 7 : index
    %c0_16 = arith.constant 0 : index
    %21 = vector.load %arg11[%c7, %c0_16] : memref<16x32xf32, #tpu.memory_space<vmem>>, vector<1x32xf32>
    %c8 = arith.constant 8 : index
    %c0_17 = arith.constant 0 : index
    %22 = vector.load %arg11[%c8, %c0_17] : memref<16x32xf32, #tpu.memory_space<vmem>>, vector<1x32xf32>
    %c9 = arith.constant 9 : index
    %c0_18 = arith.constant 0 : index
    %23 = vector.load %arg11[%c9, %c0_18] : memref<16x32xf32, #tpu.memory_space<vmem>>, vector<1x32xf32>
    %cst_19 = arith.constant dense<0.000000e+00> : vector<8xf32>
    %24 = vector.multi_reduction <add>, %16, %cst_19 [1] : vector<8x32xf32> to vector<8xf32>
    %25 = vector.shape_cast %24 : vector<8xf32> to vector<8x1xf32>
    %cst_20 = arith.constant 3.200000e+01 : f32
    %26 = vector.broadcast %cst_20 : f32 to vector<8x1xf32>
    %27 = arith.divf %25, %26 : vector<8x1xf32>
    %28 = vector.broadcast %27 : vector<8x1xf32> to vector<8x32xf32>
    %29 = arith.subf %16, %28 : vector<8x32xf32>
    %30 = arith.mulf %29, %29 : vector<8x32xf32>
    %cst_21 = arith.constant dense<0.000000e+00> : vector<8xf32>
    %31 = vector.multi_reduction <add>, %30, %cst_21 [1] : vector<8x32xf32> to vector<8xf32>
    %32 = vector.shape_cast %31 : vector<8xf32> to vector<8x1xf32>
    %cst_22 = arith.constant 3.200000e+01 : f32
    %33 = vector.broadcast %cst_22 : f32 to vector<8x1xf32>
    %34 = arith.divf %32, %33 : vector<8x1xf32>
    %cst_23 = arith.constant 9.99999997E-7 : f32
    %35 = vector.broadcast %cst_23 : f32 to vector<8x1xf32>
    %36 = arith.addf %34, %35 : vector<8x1xf32>
    %37 = math.rsqrt %36 : vector<8x1xf32>
    %38 = vector.broadcast %37 : vector<8x1xf32> to vector<8x32xf32>
    %39 = arith.mulf %29, %38 : vector<8x32xf32>
    %40 = vector.broadcast %18 : vector<1x32xf32> to vector<8x32xf32>
    %41 = arith.mulf %39, %40 : vector<8x32xf32>
    %42 = vector.broadcast %19 : vector<1x32xf32> to vector<8x32xf32>
    %43 = arith.addf %41, %42 : vector<8x32xf32>
    %44 = arith.truncf %43 : vector<8x32xf32> to vector<8x32xbf16>
    %cst_24 = arith.constant 0.000000e+00 : f32
    %45 = vector.broadcast %cst_24 : f32 to vector<8x32xf32>
    %c0_25 = arith.constant 0 : index
    %c0_26 = arith.constant 0 : index
    %c0_27 = arith.constant 0 : index
    %46 = vector.load %arg6[%c0_25, %c0_26, %c0_27] : memref<12x32x16xbf16, #tpu.memory_space<vmem>>, vector<1x32x16xbf16>
    %47 = vector.shape_cast %46 : vector<1x32x16xbf16> to vector<32x16xbf16>
    %cst_28 = arith.constant dense<0.000000e+00> : vector<8x16xf32>
    %48 = tpu.matmul %44, %47, %cst_28 {dimension_numbers = #tpu.dot_dimension_numbers<[1], [0], [0], [1], [0, 0, 1, 1], [], []>} : vector<8x32xbf16>, vector<32x16xbf16>, vector<8x16xf32> -> vector<8x16xf32>
    %c0_29 = arith.constant 0 : index
    %c0_30 = arith.constant 0 : index
    %49 = vector.load %arg12[%c0_29, %c0_30] : memref<12x16xf32, #tpu.memory_space<vmem>>, vector<1x16xf32>
    %50 = vector.broadcast %49 : vector<1x16xf32> to vector<8x16xf32>
    %51 = arith.addf %48, %50 : vector<8x16xf32>
    %c2 = arith.constant 2 : index
    %c0_31 = arith.constant 0 : index
    %c0_32 = arith.constant 0 : index
    %52 = vector.load %arg6[%c2, %c0_31, %c0_32] : memref<12x32x16xbf16, #tpu.memory_space<vmem>>, vector<1x32x16xbf16>
    %53 = vector.shape_cast %52 : vector<1x32x16xbf16> to vector<32x16xbf16>
    %cst_33 = arith.constant dense<0.000000e+00> : vector<8x16xf32>
    %54 = tpu.matmul %44, %53, %cst_33 {dimension_numbers = #tpu.dot_dimension_numbers<[1], [0], [0], [1], [0, 0, 1, 1], [], []>} : vector<8x32xbf16>, vector<32x16xbf16>, vector<8x16xf32> -> vector<8x16xf32>
    %c2_34 = arith.constant 2 : index
    %c0_35 = arith.constant 0 : index
    %55 = vector.load %arg12[%c2_34, %c0_35] : memref<12x16xf32, #tpu.memory_space<vmem>>, vector<1x16xf32>
    %56 = vector.broadcast %55 : vector<1x16xf32> to vector<8x16xf32>
    %57 = arith.addf %54, %56 : vector<8x16xf32>
    %c4_36 = arith.constant 4 : index
    %c0_37 = arith.constant 0 : index
    %c0_38 = arith.constant 0 : index
    %58 = vector.load %arg6[%c4_36, %c0_37, %c0_38] : memref<12x32x16xbf16, #tpu.memory_space<vmem>>, vector<1x32x16xbf16>
    %59 = vector.shape_cast %58 : vector<1x32x16xbf16> to vector<32x16xbf16>
    %cst_39 = arith.constant dense<0.000000e+00> : vector<8x16xf32>
    %60 = tpu.matmul %44, %59, %cst_39 {dimension_numbers = #tpu.dot_dimension_numbers<[1], [0], [0], [1], [0, 0, 1, 1], [], []>} : vector<8x32xbf16>, vector<32x16xbf16>, vector<8x16xf32> -> vector<8x16xf32>
    %c4_40 = arith.constant 4 : index
    %c0_41 = arith.constant 0 : index
    %61 = vector.load %arg12[%c4_40, %c0_41] : memref<12x16xf32, #tpu.memory_space<vmem>>, vector<1x16xf32>
    %62 = vector.broadcast %61 : vector<1x16xf32> to vector<8x16xf32>
    %63 = arith.addf %60, %62 : vector<8x16xf32>
    %64 = arith.truncf %51 : vector<8x16xf32> to vector<8x16xbf16>
    %65 = arith.truncf %57 : vector<8x16xf32> to vector<8x16xbf16>
    %cst_42 = arith.constant dense<0.000000e+00> : vector<8x8xf32>
    %66 = tpu.matmul %64, %65, %cst_42 {dimension_numbers = #tpu.dot_dimension_numbers<[1], [1], [0], [0], [0, 0, 1, 0], [], []>} : vector<8x16xbf16>, vector<8x16xbf16>, vector<8x8xf32> -> vector<8x8xf32>
    %67 = arith.addf %66, %17 : vector<8x8xf32>
    %cst_43 = arith.constant dense<0xFF800000> : vector<8xf32>
    %68 = vector.multi_reduction <maximumf>, %67, %cst_43 [1] : vector<8x8xf32> to vector<8xf32>
    %69 = vector.shape_cast %68 : vector<8xf32> to vector<8x1xf32>
    %70 = vector.broadcast %69 : vector<8x1xf32> to vector<8x8xf32>
    %71 = arith.subf %67, %70 : vector<8x8xf32>
    %72 = math.exp %71 : vector<8x8xf32>
    %cst_44 = arith.constant dense<0.000000e+00> : vector<8xf32>
    %73 = vector.multi_reduction <add>, %72, %cst_44 [1] : vector<8x8xf32> to vector<8xf32>
    %74 = vector.shape_cast %73 : vector<8xf32> to vector<8x1xf32>
    %75 = tpu.reciprocal %74 {approx = true} : vector<8x1xf32> -> vector<8x1xf32>
    %76 = vector.broadcast %75 : vector<8x1xf32> to vector<8x8xf32>
    %77 = arith.mulf %72, %76 : vector<8x8xf32>
    %78 = arith.truncf %77 : vector<8x8xf32> to vector<8x8xbf16>
    %79 = arith.truncf %63 : vector<8x16xf32> to vector<8x16xbf16>
    %cst_45 = arith.constant dense<0.000000e+00> : vector<8x16xf32>
    %80 = tpu.matmul %78, %79, %cst_45 {dimension_numbers = #tpu.dot_dimension_numbers<[1], [0], [0], [1], [0, 0, 1, 1], [], []>} : vector<8x8xbf16>, vector<8x16xbf16>, vector<8x16xf32> -> vector<8x16xf32>
    %81 = arith.truncf %80 : vector<8x16xf32> to vector<8x16xbf16>
    %c0_46 = arith.constant 0 : index
    %c0_47 = arith.constant 0 : index
    %c0_48 = arith.constant 0 : index
    %82 = vector.load %arg7[%c0_46, %c0_47, %c0_48] : memref<4x16x32xbf16, #tpu.memory_space<vmem>>, vector<1x16x32xbf16>
    %83 = vector.shape_cast %82 : vector<1x16x32xbf16> to vector<16x32xbf16>
    %cst_49 = arith.constant dense<0.000000e+00> : vector<8x32xf32>
    %84 = tpu.matmul %81, %83, %cst_49 {dimension_numbers = #tpu.dot_dimension_numbers<[1], [0], [0], [1], [0, 0, 1, 1], [], []>} : vector<8x16xbf16>, vector<16x32xbf16>, vector<8x32xf32> -> vector<8x32xf32>
    %85 = arith.addf %45, %84 : vector<8x32xf32>
    %c1_50 = arith.constant 1 : index
    %c0_51 = arith.constant 0 : index
    %c0_52 = arith.constant 0 : index
    %86 = vector.load %arg6[%c1_50, %c0_51, %c0_52] : memref<12x32x16xbf16, #tpu.memory_space<vmem>>, vector<1x32x16xbf16>
    %87 = vector.shape_cast %86 : vector<1x32x16xbf16> to vector<32x16xbf16>
    %cst_53 = arith.constant dense<0.000000e+00> : vector<8x16xf32>
    %88 = tpu.matmul %44, %87, %cst_53 {dimension_numbers = #tpu.dot_dimension_numbers<[1], [0], [0], [1], [0, 0, 1, 1], [], []>} : vector<8x32xbf16>, vector<32x16xbf16>, vector<8x16xf32> -> vector<8x16xf32>
    %c1_54 = arith.constant 1 : index
    %c0_55 = arith.constant 0 : index
    %89 = vector.load %arg12[%c1_54, %c0_55] : memref<12x16xf32, #tpu.memory_space<vmem>>, vector<1x16xf32>
    %90 = vector.broadcast %89 : vector<1x16xf32> to vector<8x16xf32>
    %91 = arith.addf %88, %90 : vector<8x16xf32>
    %c3 = arith.constant 3 : index
    %c0_56 = arith.constant 0 : index
    %c0_57 = arith.constant 0 : index
    %92 = vector.load %arg6[%c3, %c0_56, %c0_57] : memref<12x32x16xbf16, #tpu.memory_space<vmem>>, vector<1x32x16xbf16>
    %93 = vector.shape_cast %92 : vector<1x32x16xbf16> to vector<32x16xbf16>
    %cst_58 = arith.constant dense<0.000000e+00> : vector<8x16xf32>
    %94 = tpu.matmul %44, %93, %cst_58 {dimension_numbers = #tpu.dot_dimension_numbers<[1], [0], [0], [1], [0, 0, 1, 1], [], []>} : vector<8x32xbf16>, vector<32x16xbf16>, vector<8x16xf32> -> vector<8x16xf32>
    %c3_59 = arith.constant 3 : index
    %c0_60 = arith.constant 0 : index
    %95 = vector.load %arg12[%c3_59, %c0_60] : memref<12x16xf32, #tpu.memory_space<vmem>>, vector<1x16xf32>
    %96 = vector.broadcast %95 : vector<1x16xf32> to vector<8x16xf32>
    %97 = arith.addf %94, %96 : vector<8x16xf32>
    %c5_61 = arith.constant 5 : index
    %c0_62 = arith.constant 0 : index
    %c0_63 = arith.constant 0 : index
    %98 = vector.load %arg6[%c5_61, %c0_62, %c0_63] : memref<12x32x16xbf16, #tpu.memory_space<vmem>>, vector<1x32x16xbf16>
    %99 = vector.shape_cast %98 : vector<1x32x16xbf16> to vector<32x16xbf16>
    %cst_64 = arith.constant dense<0.000000e+00> : vector<8x16xf32>
    %100 = tpu.matmul %44, %99, %cst_64 {dimension_numbers = #tpu.dot_dimension_numbers<[1], [0], [0], [1], [0, 0, 1, 1], [], []>} : vector<8x32xbf16>, vector<32x16xbf16>, vector<8x16xf32> -> vector<8x16xf32>
    %c5_65 = arith.constant 5 : index
    %c0_66 = arith.constant 0 : index
    %101 = vector.load %arg12[%c5_65, %c0_66] : memref<12x16xf32, #tpu.memory_space<vmem>>, vector<1x16xf32>
    %102 = vector.broadcast %101 : vector<1x16xf32> to vector<8x16xf32>
    %103 = arith.addf %100, %102 : vector<8x16xf32>
    %104 = arith.truncf %91 : vector<8x16xf32> to vector<8x16xbf16>
    %105 = arith.truncf %97 : vector<8x16xf32> to vector<8x16xbf16>
    %cst_67 = arith.constant dense<0.000000e+00> : vector<8x8xf32>
    %106 = tpu.matmul %104, %105, %cst_67 {dimension_numbers = #tpu.dot_dimension_numbers<[1], [1], [0], [0], [0, 0, 1, 0], [], []>} : vector<8x16xbf16>, vector<8x16xbf16>, vector<8x8xf32> -> vector<8x8xf32>
    %107 = arith.addf %106, %17 : vector<8x8xf32>
    %cst_68 = arith.constant dense<0xFF800000> : vector<8xf32>
    %108 = vector.multi_reduction <maximumf>, %107, %cst_68 [1] : vector<8x8xf32> to vector<8xf32>
    %109 = vector.shape_cast %108 : vector<8xf32> to vector<8x1xf32>
    %110 = vector.broadcast %109 : vector<8x1xf32> to vector<8x8xf32>
    %111 = arith.subf %107, %110 : vector<8x8xf32>
    %112 = math.exp %111 : vector<8x8xf32>
    %cst_69 = arith.constant dense<0.000000e+00> : vector<8xf32>
    %113 = vector.multi_reduction <add>, %112, %cst_69 [1] : vector<8x8xf32> to vector<8xf32>
    %114 = vector.shape_cast %113 : vector<8xf32> to vector<8x1xf32>
    %115 = tpu.reciprocal %114 {approx = true} : vector<8x1xf32> -> vector<8x1xf32>
    %116 = vector.broadcast %115 : vector<8x1xf32> to vector<8x8xf32>
    %117 = arith.mulf %112, %116 : vector<8x8xf32>
    %118 = arith.truncf %117 : vector<8x8xf32> to vector<8x8xbf16>
    %119 = arith.truncf %103 : vector<8x16xf32> to vector<8x16xbf16>
    %cst_70 = arith.constant dense<0.000000e+00> : vector<8x16xf32>
    %120 = tpu.matmul %118, %119, %cst_70 {dimension_numbers = #tpu.dot_dimension_numbers<[1], [0], [0], [1], [0, 0, 1, 1], [], []>} : vector<8x8xbf16>, vector<8x16xbf16>, vector<8x16xf32> -> vector<8x16xf32>
    %121 = arith.truncf %120 : vector<8x16xf32> to vector<8x16xbf16>
    %c1_71 = arith.constant 1 : index
    %c0_72 = arith.constant 0 : index
    %c0_73 = arith.constant 0 : index
    %122 = vector.load %arg7[%c1_71, %c0_72, %c0_73] : memref<4x16x32xbf16, #tpu.memory_space<vmem>>, vector<1x16x32xbf16>
    %123 = vector.shape_cast %122 : vector<1x16x32xbf16> to vector<16x32xbf16>
    %cst_74 = arith.constant dense<0.000000e+00> : vector<8x32xf32>
    %124 = tpu.matmul %121, %123, %cst_74 {dimension_numbers = #tpu.dot_dimension_numbers<[1], [0], [0], [1], [0, 0, 1, 1], [], []>} : vector<8x16xbf16>, vector<16x32xbf16>, vector<8x32xf32> -> vector<8x32xf32>
    %125 = arith.addf %85, %124 : vector<8x32xf32>
    %126 = arith.addf %16, %125 : vector<8x32xf32>
    %127 = vector.broadcast %20 : vector<1x32xf32> to vector<8x32xf32>
    %128 = arith.addf %126, %127 : vector<8x32xf32>
    %cst_75 = arith.constant dense<0.000000e+00> : vector<8xf32>
    %129 = vector.multi_reduction <add>, %128, %cst_75 [1] : vector<8x32xf32> to vector<8xf32>
    %130 = vector.shape_cast %129 : vector<8xf32> to vector<8x1xf32>
    %cst_76 = arith.constant 3.200000e+01 : f32
    %131 = vector.broadcast %cst_76 : f32 to vector<8x1xf32>
    %132 = arith.divf %130, %131 : vector<8x1xf32>
    %133 = vector.broadcast %132 : vector<8x1xf32> to vector<8x32xf32>
    %134 = arith.subf %128, %133 : vector<8x32xf32>
    %135 = arith.mulf %134, %134 : vector<8x32xf32>
    %cst_77 = arith.constant dense<0.000000e+00> : vector<8xf32>
    %136 = vector.multi_reduction <add>, %135, %cst_77 [1] : vector<8x32xf32> to vector<8xf32>
    %137 = vector.shape_cast %136 : vector<8xf32> to vector<8x1xf32>
    %cst_78 = arith.constant 3.200000e+01 : f32
    %138 = vector.broadcast %cst_78 : f32 to vector<8x1xf32>
    %139 = arith.divf %137, %138 : vector<8x1xf32>
    %cst_79 = arith.constant 9.99999997E-7 : f32
    %140 = vector.broadcast %cst_79 : f32 to vector<8x1xf32>
    %141 = arith.addf %139, %140 : vector<8x1xf32>
    %142 = math.rsqrt %141 : vector<8x1xf32>
    %143 = vector.broadcast %142 : vector<8x1xf32> to vector<8x32xf32>
    %144 = arith.mulf %134, %143 : vector<8x32xf32>
    %145 = vector.broadcast %21 : vector<1x32xf32> to vector<8x32xf32>
    %146 = arith.mulf %144, %145 : vector<8x32xf32>
    %147 = vector.broadcast %22 : vector<1x32xf32> to vector<8x32xf32>
    %148 = arith.addf %146, %147 : vector<8x32xf32>
    %149 = arith.truncf %148 : vector<8x32xf32> to vector<8x32xbf16>
    %c0_80 = arith.constant 0 : index
    %c0_81 = arith.constant 0 : index
    %c0_82 = arith.constant 0 : index
    %150 = vector.load %arg8[%c0_80, %c0_81, %c0_82] : memref<2x32x128xbf16, #tpu.memory_space<vmem>>, vector<1x32x128xbf16>
    %151 = vector.shape_cast %150 : vector<1x32x128xbf16> to vector<32x128xbf16>
    %cst_83 = arith.constant dense<0.000000e+00> : vector<8x128xf32>
    %152 = tpu.matmul %149, %151, %cst_83 {dimension_numbers = #tpu.dot_dimension_numbers<[1], [0], [0], [1], [0, 0, 1, 1], [], []>} : vector<8x32xbf16>, vector<32x128xbf16>, vector<8x128xf32> -> vector<8x128xf32>
    %c0_84 = arith.constant 0 : index
    %c0_85 = arith.constant 0 : index
    %153 = vector.load %arg13[%c0_84, %c0_85] : memref<2x128xf32, #tpu.memory_space<vmem>>, vector<1x128xf32>
    %154 = vector.broadcast %153 : vector<1x128xf32> to vector<8x128xf32>
    %155 = arith.addf %152, %154 : vector<8x128xf32>
    %156 = arith.mulf %155, %155 : vector<8x128xf32>
    %157 = arith.mulf %155, %156 : vector<8x128xf32>
    %cst_86 = arith.constant 4.471500e-02 : f32
    %158 = vector.broadcast %cst_86 : f32 to vector<8x128xf32>
    %159 = arith.mulf %158, %157 : vector<8x128xf32>
    %160 = arith.addf %155, %159 : vector<8x128xf32>
    %cst_87 = arith.constant 0.797884583 : f32
    %161 = vector.broadcast %cst_87 : f32 to vector<8x128xf32>
    %162 = arith.mulf %161, %160 : vector<8x128xf32>
    %163 = math.tanh %162 : vector<8x128xf32>
    %cst_88 = arith.constant 1.000000e+00 : f32
    %164 = vector.broadcast %cst_88 : f32 to vector<8x128xf32>
    %165 = arith.addf %164, %163 : vector<8x128xf32>
    %cst_89 = arith.constant 5.000000e-01 : f32
    %166 = vector.broadcast %cst_89 : f32 to vector<8x128xf32>
    %167 = arith.mulf %166, %165 : vector<8x128xf32>
    %168 = arith.mulf %155, %167 : vector<8x128xf32>
    %169 = arith.truncf %168 : vector<8x128xf32> to vector<8x128xbf16>
    %c0_90 = arith.constant 0 : index
    %c0_91 = arith.constant 0 : index
    %c0_92 = arith.constant 0 : index
    %170 = vector.load %arg9[%c0_90, %c0_91, %c0_92] : memref<2x128x32xbf16, #tpu.memory_space<vmem>>, vector<1x128x32xbf16>
    %171 = vector.shape_cast %170 : vector<1x128x32xbf16> to vector<128x32xbf16>
    %cst_93 = arith.constant dense<0.000000e+00> : vector<8x32xf32>
    %172 = tpu.matmul %169, %171, %cst_93 {dimension_numbers = #tpu.dot_dimension_numbers<[1], [0], [0], [1], [0, 0, 1, 1], [], []>} : vector<8x128xbf16>, vector<128x32xbf16>, vector<8x32xf32> -> vector<8x32xf32>
    %173 = arith.addf %128, %172 : vector<8x32xf32>
    %174 = vector.broadcast %23 : vector<1x32xf32> to vector<8x32xf32>
    %175 = arith.addf %173, %174 : vector<8x32xf32>
    %c10 = arith.constant 10 : index
    %c0_94 = arith.constant 0 : index
    %176 = vector.load %arg11[%c10, %c0_94] : memref<16x32xf32, #tpu.memory_space<vmem>>, vector<1x32xf32>
    %c11 = arith.constant 11 : index
    %c0_95 = arith.constant 0 : index
    %177 = vector.load %arg11[%c11, %c0_95] : memref<16x32xf32, #tpu.memory_space<vmem>>, vector<1x32xf32>
    %c12 = arith.constant 12 : index
    %c0_96 = arith.constant 0 : index
    %178 = vector.load %arg11[%c12, %c0_96] : memref<16x32xf32, #tpu.memory_space<vmem>>, vector<1x32xf32>
    %c13 = arith.constant 13 : index
    %c0_97 = arith.constant 0 : index
    %179 = vector.load %arg11[%c13, %c0_97] : memref<16x32xf32, #tpu.memory_space<vmem>>, vector<1x32xf32>
    %c14 = arith.constant 14 : index
    %c0_98 = arith.constant 0 : index
    %180 = vector.load %arg11[%c14, %c0_98] : memref<16x32xf32, #tpu.memory_space<vmem>>, vector<1x32xf32>
    %c15 = arith.constant 15 : index
    %c0_99 = arith.constant 0 : index
    %181 = vector.load %arg11[%c15, %c0_99] : memref<16x32xf32, #tpu.memory_space<vmem>>, vector<1x32xf32>
    %cst_100 = arith.constant dense<0.000000e+00> : vector<8xf32>
    %182 = vector.multi_reduction <add>, %175, %cst_100 [1] : vector<8x32xf32> to vector<8xf32>
    %183 = vector.shape_cast %182 : vector<8xf32> to vector<8x1xf32>
    %cst_101 = arith.constant 3.200000e+01 : f32
    %184 = vector.broadcast %cst_101 : f32 to vector<8x1xf32>
    %185 = arith.divf %183, %184 : vector<8x1xf32>
    %186 = vector.broadcast %185 : vector<8x1xf32> to vector<8x32xf32>
    %187 = arith.subf %175, %186 : vector<8x32xf32>
    %188 = arith.mulf %187, %187 : vector<8x32xf32>
    %cst_102 = arith.constant dense<0.000000e+00> : vector<8xf32>
    %189 = vector.multi_reduction <add>, %188, %cst_102 [1] : vector<8x32xf32> to vector<8xf32>
    %190 = vector.shape_cast %189 : vector<8xf32> to vector<8x1xf32>
    %cst_103 = arith.constant 3.200000e+01 : f32
    %191 = vector.broadcast %cst_103 : f32 to vector<8x1xf32>
    %192 = arith.divf %190, %191 : vector<8x1xf32>
    %cst_104 = arith.constant 9.99999997E-7 : f32
    %193 = vector.broadcast %cst_104 : f32 to vector<8x1xf32>
    %194 = arith.addf %192, %193 : vector<8x1xf32>
    %195 = math.rsqrt %194 : vector<8x1xf32>
    %196 = vector.broadcast %195 : vector<8x1xf32> to vector<8x32xf32>
    %197 = arith.mulf %187, %196 : vector<8x32xf32>
    %198 = vector.broadcast %176 : vector<1x32xf32> to vector<8x32xf32>
    %199 = arith.mulf %197, %198 : vector<8x32xf32>
    %200 = vector.broadcast %177 : vector<1x32xf32> to vector<8x32xf32>
    %201 = arith.addf %199, %200 : vector<8x32xf32>
    %202 = arith.truncf %201 : vector<8x32xf32> to vector<8x32xbf16>
    %cst_105 = arith.constant 0.000000e+00 : f32
    %203 = vector.broadcast %cst_105 : f32 to vector<8x32xf32>
    %c6_106 = arith.constant 6 : index
    %c0_107 = arith.constant 0 : index
    %c0_108 = arith.constant 0 : index
    %204 = vector.load %arg6[%c6_106, %c0_107, %c0_108] : memref<12x32x16xbf16, #tpu.memory_space<vmem>>, vector<1x32x16xbf16>
    %205 = vector.shape_cast %204 : vector<1x32x16xbf16> to vector<32x16xbf16>
    %cst_109 = arith.constant dense<0.000000e+00> : vector<8x16xf32>
    %206 = tpu.matmul %202, %205, %cst_109 {dimension_numbers = #tpu.dot_dimension_numbers<[1], [0], [0], [1], [0, 0, 1, 1], [], []>} : vector<8x32xbf16>, vector<32x16xbf16>, vector<8x16xf32> -> vector<8x16xf32>
    %c6_110 = arith.constant 6 : index
    %c0_111 = arith.constant 0 : index
    %207 = vector.load %arg12[%c6_110, %c0_111] : memref<12x16xf32, #tpu.memory_space<vmem>>, vector<1x16xf32>
    %208 = vector.broadcast %207 : vector<1x16xf32> to vector<8x16xf32>
    %209 = arith.addf %206, %208 : vector<8x16xf32>
    %c8_112 = arith.constant 8 : index
    %c0_113 = arith.constant 0 : index
    %c0_114 = arith.constant 0 : index
    %210 = vector.load %arg6[%c8_112, %c0_113, %c0_114] : memref<12x32x16xbf16, #tpu.memory_space<vmem>>, vector<1x32x16xbf16>
    %211 = vector.shape_cast %210 : vector<1x32x16xbf16> to vector<32x16xbf16>
    %cst_115 = arith.constant dense<0.000000e+00> : vector<8x16xf32>
    %212 = tpu.matmul %202, %211, %cst_115 {dimension_numbers = #tpu.dot_dimension_numbers<[1], [0], [0], [1], [0, 0, 1, 1], [], []>} : vector<8x32xbf16>, vector<32x16xbf16>, vector<8x16xf32> -> vector<8x16xf32>
    %c8_116 = arith.constant 8 : index
    %c0_117 = arith.constant 0 : index
    %213 = vector.load %arg12[%c8_116, %c0_117] : memref<12x16xf32, #tpu.memory_space<vmem>>, vector<1x16xf32>
    %214 = vector.broadcast %213 : vector<1x16xf32> to vector<8x16xf32>
    %215 = arith.addf %212, %214 : vector<8x16xf32>
    %c10_118 = arith.constant 10 : index
    %c0_119 = arith.constant 0 : index
    %c0_120 = arith.constant 0 : index
    %216 = vector.load %arg6[%c10_118, %c0_119, %c0_120] : memref<12x32x16xbf16, #tpu.memory_space<vmem>>, vector<1x32x16xbf16>
    %217 = vector.shape_cast %216 : vector<1x32x16xbf16> to vector<32x16xbf16>
    %cst_121 = arith.constant dense<0.000000e+00> : vector<8x16xf32>
    %218 = tpu.matmul %202, %217, %cst_121 {dimension_numbers = #tpu.dot_dimension_numbers<[1], [0], [0], [1], [0, 0, 1, 1], [], []>} : vector<8x32xbf16>, vector<32x16xbf16>, vector<8x16xf32> -> vector<8x16xf32>
    %c10_122 = arith.constant 10 : index
    %c0_123 = arith.constant 0 : index
    %219 = vector.load %arg12[%c10_122, %c0_123] : memref<12x16xf32, #tpu.memory_space<vmem>>, vector<1x16xf32>
    %220 = vector.broadcast %219 : vector<1x16xf32> to vector<8x16xf32>
    %221 = arith.addf %218, %220 : vector<8x16xf32>
    %222 = arith.truncf %209 : vector<8x16xf32> to vector<8x16xbf16>
    %223 = arith.truncf %215 : vector<8x16xf32> to vector<8x16xbf16>
    %cst_124 = arith.constant dense<0.000000e+00> : vector<8x8xf32>
    %224 = tpu.matmul %222, %223, %cst_124 {dimension_numbers = #tpu.dot_dimension_numbers<[1], [1], [0], [0], [0, 0, 1, 0], [], []>} : vector<8x16xbf16>, vector<8x16xbf16>, vector<8x8xf32> -> vector<8x8xf32>
    %225 = arith.addf %224, %17 : vector<8x8xf32>
    %cst_125 = arith.constant dense<0xFF800000> : vector<8xf32>
    %226 = vector.multi_reduction <maximumf>, %225, %cst_125 [1] : vector<8x8xf32> to vector<8xf32>
    %227 = vector.shape_cast %226 : vector<8xf32> to vector<8x1xf32>
    %228 = vector.broadcast %227 : vector<8x1xf32> to vector<8x8xf32>
    %229 = arith.subf %225, %228 : vector<8x8xf32>
    %230 = math.exp %229 : vector<8x8xf32>
    %cst_126 = arith.constant dense<0.000000e+00> : vector<8xf32>
    %231 = vector.multi_reduction <add>, %230, %cst_126 [1] : vector<8x8xf32> to vector<8xf32>
    %232 = vector.shape_cast %231 : vector<8xf32> to vector<8x1xf32>
    %233 = tpu.reciprocal %232 {approx = true} : vector<8x1xf32> -> vector<8x1xf32>
    %234 = vector.broadcast %233 : vector<8x1xf32> to vector<8x8xf32>
    %235 = arith.mulf %230, %234 : vector<8x8xf32>
    %236 = arith.truncf %235 : vector<8x8xf32> to vector<8x8xbf16>
    %237 = arith.truncf %221 : vector<8x16xf32> to vector<8x16xbf16>
    %cst_127 = arith.constant dense<0.000000e+00> : vector<8x16xf32>
    %238 = tpu.matmul %236, %237, %cst_127 {dimension_numbers = #tpu.dot_dimension_numbers<[1], [0], [0], [1], [0, 0, 1, 1], [], []>} : vector<8x8xbf16>, vector<8x16xbf16>, vector<8x16xf32> -> vector<8x16xf32>
    %239 = arith.truncf %238 : vector<8x16xf32> to vector<8x16xbf16>
    %c2_128 = arith.constant 2 : index
    %c0_129 = arith.constant 0 : index
    %c0_130 = arith.constant 0 : index
    %240 = vector.load %arg7[%c2_128, %c0_129, %c0_130] : memref<4x16x32xbf16, #tpu.memory_space<vmem>>, vector<1x16x32xbf16>
    %241 = vector.shape_cast %240 : vector<1x16x32xbf16> to vector<16x32xbf16>
    %cst_131 = arith.constant dense<0.000000e+00> : vector<8x32xf32>
    %242 = tpu.matmul %239, %241, %cst_131 {dimension_numbers = #tpu.dot_dimension_numbers<[1], [0], [0], [1], [0, 0, 1, 1], [], []>} : vector<8x16xbf16>, vector<16x32xbf16>, vector<8x32xf32> -> vector<8x32xf32>
    %243 = arith.addf %203, %242 : vector<8x32xf32>
    %c7_132 = arith.constant 7 : index
    %c0_133 = arith.constant 0 : index
    %c0_134 = arith.constant 0 : index
    %244 = vector.load %arg6[%c7_132, %c0_133, %c0_134] : memref<12x32x16xbf16, #tpu.memory_space<vmem>>, vector<1x32x16xbf16>
    %245 = vector.shape_cast %244 : vector<1x32x16xbf16> to vector<32x16xbf16>
    %cst_135 = arith.constant dense<0.000000e+00> : vector<8x16xf32>
    %246 = tpu.matmul %202, %245, %cst_135 {dimension_numbers = #tpu.dot_dimension_numbers<[1], [0], [0], [1], [0, 0, 1, 1], [], []>} : vector<8x32xbf16>, vector<32x16xbf16>, vector<8x16xf32> -> vector<8x16xf32>
    %c7_136 = arith.constant 7 : index
    %c0_137 = arith.constant 0 : index
    %247 = vector.load %arg12[%c7_136, %c0_137] : memref<12x16xf32, #tpu.memory_space<vmem>>, vector<1x16xf32>
    %248 = vector.broadcast %247 : vector<1x16xf32> to vector<8x16xf32>
    %249 = arith.addf %246, %248 : vector<8x16xf32>
    %c9_138 = arith.constant 9 : index
    %c0_139 = arith.constant 0 : index
    %c0_140 = arith.constant 0 : index
    %250 = vector.load %arg6[%c9_138, %c0_139, %c0_140] : memref<12x32x16xbf16, #tpu.memory_space<vmem>>, vector<1x32x16xbf16>
    %251 = vector.shape_cast %250 : vector<1x32x16xbf16> to vector<32x16xbf16>
    %cst_141 = arith.constant dense<0.000000e+00> : vector<8x16xf32>
    %252 = tpu.matmul %202, %251, %cst_141 {dimension_numbers = #tpu.dot_dimension_numbers<[1], [0], [0], [1], [0, 0, 1, 1], [], []>} : vector<8x32xbf16>, vector<32x16xbf16>, vector<8x16xf32> -> vector<8x16xf32>
    %c9_142 = arith.constant 9 : index
    %c0_143 = arith.constant 0 : index
    %253 = vector.load %arg12[%c9_142, %c0_143] : memref<12x16xf32, #tpu.memory_space<vmem>>, vector<1x16xf32>
    %254 = vector.broadcast %253 : vector<1x16xf32> to vector<8x16xf32>
    %255 = arith.addf %252, %254 : vector<8x16xf32>
    %c11_144 = arith.constant 11 : index
    %c0_145 = arith.constant 0 : index
    %c0_146 = arith.constant 0 : index
    %256 = vector.load %arg6[%c11_144, %c0_145, %c0_146] : memref<12x32x16xbf16, #tpu.memory_space<vmem>>, vector<1x32x16xbf16>
    %257 = vector.shape_cast %256 : vector<1x32x16xbf16> to vector<32x16xbf16>
    %cst_147 = arith.constant dense<0.000000e+00> : vector<8x16xf32>
    %258 = tpu.matmul %202, %257, %cst_147 {dimension_numbers = #tpu.dot_dimension_numbers<[1], [0], [0], [1], [0, 0, 1, 1], [], []>} : vector<8x32xbf16>, vector<32x16xbf16>, vector<8x16xf32> -> vector<8x16xf32>
    %c11_148 = arith.constant 11 : index
    %c0_149 = arith.constant 0 : index
    %259 = vector.load %arg12[%c11_148, %c0_149] : memref<12x16xf32, #tpu.memory_space<vmem>>, vector<1x16xf32>
    %260 = vector.broadcast %259 : vector<1x16xf32> to vector<8x16xf32>
    %261 = arith.addf %258, %260 : vector<8x16xf32>
    %262 = arith.truncf %249 : vector<8x16xf32> to vector<8x16xbf16>
    %263 = arith.truncf %255 : vector<8x16xf32> to vector<8x16xbf16>
    %cst_150 = arith.constant dense<0.000000e+00> : vector<8x8xf32>
    %264 = tpu.matmul %262, %263, %cst_150 {dimension_numbers = #tpu.dot_dimension_numbers<[1], [1], [0], [0], [0, 0, 1, 0], [], []>} : vector<8x16xbf16>, vector<8x16xbf16>, vector<8x8xf32> -> vector<8x8xf32>
    %265 = arith.addf %264, %17 : vector<8x8xf32>
    %cst_151 = arith.constant dense<0xFF800000> : vector<8xf32>
    %266 = vector.multi_reduction <maximumf>, %265, %cst_151 [1] : vector<8x8xf32> to vector<8xf32>
    %267 = vector.shape_cast %266 : vector<8xf32> to vector<8x1xf32>
    %268 = vector.broadcast %267 : vector<8x1xf32> to vector<8x8xf32>
    %269 = arith.subf %265, %268 : vector<8x8xf32>
    %270 = math.exp %269 : vector<8x8xf32>
    %cst_152 = arith.constant dense<0.000000e+00> : vector<8xf32>
    %271 = vector.multi_reduction <add>, %270, %cst_152 [1] : vector<8x8xf32> to vector<8xf32>
    %272 = vector.shape_cast %271 : vector<8xf32> to vector<8x1xf32>
    %273 = tpu.reciprocal %272 {approx = true} : vector<8x1xf32> -> vector<8x1xf32>
    %274 = vector.broadcast %273 : vector<8x1xf32> to vector<8x8xf32>
    %275 = arith.mulf %270, %274 : vector<8x8xf32>
    %276 = arith.truncf %275 : vector<8x8xf32> to vector<8x8xbf16>
    %277 = arith.truncf %261 : vector<8x16xf32> to vector<8x16xbf16>
    %cst_153 = arith.constant dense<0.000000e+00> : vector<8x16xf32>
    %278 = tpu.matmul %276, %277, %cst_153 {dimension_numbers = #tpu.dot_dimension_numbers<[1], [0], [0], [1], [0, 0, 1, 1], [], []>} : vector<8x8xbf16>, vector<8x16xbf16>, vector<8x16xf32> -> vector<8x16xf32>
    %279 = arith.truncf %278 : vector<8x16xf32> to vector<8x16xbf16>
    %c3_154 = arith.constant 3 : index
    %c0_155 = arith.constant 0 : index
    %c0_156 = arith.constant 0 : index
    %280 = vector.load %arg7[%c3_154, %c0_155, %c0_156] : memref<4x16x32xbf16, #tpu.memory_space<vmem>>, vector<1x16x32xbf16>
    %281 = vector.shape_cast %280 : vector<1x16x32xbf16> to vector<16x32xbf16>
    %cst_157 = arith.constant dense<0.000000e+00> : vector<8x32xf32>
    %282 = tpu.matmul %279, %281, %cst_157 {dimension_numbers = #tpu.dot_dimension_numbers<[1], [0], [0], [1], [0, 0, 1, 1], [], []>} : vector<8x16xbf16>, vector<16x32xbf16>, vector<8x32xf32> -> vector<8x32xf32>
    %283 = arith.addf %243, %282 : vector<8x32xf32>
    %284 = arith.addf %175, %283 : vector<8x32xf32>
    %285 = vector.broadcast %178 : vector<1x32xf32> to vector<8x32xf32>
    %286 = arith.addf %284, %285 : vector<8x32xf32>
    %cst_158 = arith.constant dense<0.000000e+00> : vector<8xf32>
    %287 = vector.multi_reduction <add>, %286, %cst_158 [1] : vector<8x32xf32> to vector<8xf32>
    %288 = vector.shape_cast %287 : vector<8xf32> to vector<8x1xf32>
    %cst_159 = arith.constant 3.200000e+01 : f32
    %289 = vector.broadcast %cst_159 : f32 to vector<8x1xf32>
    %290 = arith.divf %288, %289 : vector<8x1xf32>
    %291 = vector.broadcast %290 : vector<8x1xf32> to vector<8x32xf32>
    %292 = arith.subf %286, %291 : vector<8x32xf32>
    %293 = arith.mulf %292, %292 : vector<8x32xf32>
    %cst_160 = arith.constant dense<0.000000e+00> : vector<8xf32>
    %294 = vector.multi_reduction <add>, %293, %cst_160 [1] : vector<8x32xf32> to vector<8xf32>
    %295 = vector.shape_cast %294 : vector<8xf32> to vector<8x1xf32>
    %cst_161 = arith.constant 3.200000e+01 : f32
    %296 = vector.broadcast %cst_161 : f32 to vector<8x1xf32>
    %297 = arith.divf %295, %296 : vector<8x1xf32>
    %cst_162 = arith.constant 9.99999997E-7 : f32
    %298 = vector.broadcast %cst_162 : f32 to vector<8x1xf32>
    %299 = arith.addf %297, %298 : vector<8x1xf32>
    %300 = math.rsqrt %299 : vector<8x1xf32>
    %301 = vector.broadcast %300 : vector<8x1xf32> to vector<8x32xf32>
    %302 = arith.mulf %292, %301 : vector<8x32xf32>
    %303 = vector.broadcast %179 : vector<1x32xf32> to vector<8x32xf32>
    %304 = arith.mulf %302, %303 : vector<8x32xf32>
    %305 = vector.broadcast %180 : vector<1x32xf32> to vector<8x32xf32>
    %306 = arith.addf %304, %305 : vector<8x32xf32>
    %307 = arith.truncf %306 : vector<8x32xf32> to vector<8x32xbf16>
    %c1_163 = arith.constant 1 : index
    %c0_164 = arith.constant 0 : index
    %c0_165 = arith.constant 0 : index
    %308 = vector.load %arg8[%c1_163, %c0_164, %c0_165] : memref<2x32x128xbf16, #tpu.memory_space<vmem>>, vector<1x32x128xbf16>
    %309 = vector.shape_cast %308 : vector<1x32x128xbf16> to vector<32x128xbf16>
    %cst_166 = arith.constant dense<0.000000e+00> : vector<8x128xf32>
    %310 = tpu.matmul %307, %309, %cst_166 {dimension_numbers = #tpu.dot_dimension_numbers<[1], [0], [0], [1], [0, 0, 1, 1], [], []>} : vector<8x32xbf16>, vector<32x128xbf16>, vector<8x128xf32> -> vector<8x128xf32>
    %c1_167 = arith.constant 1 : index
    %c0_168 = arith.constant 0 : index
    %311 = vector.load %arg13[%c1_167, %c0_168] : memref<2x128xf32, #tpu.memory_space<vmem>>, vector<1x128xf32>
    %312 = vector.broadcast %311 : vector<1x128xf32> to vector<8x128xf32>
    %313 = arith.addf %310, %312 : vector<8x128xf32>
    %314 = arith.mulf %313, %313 : vector<8x128xf32>
    %315 = arith.mulf %313, %314 : vector<8x128xf32>
    %cst_169 = arith.constant 4.471500e-02 : f32
    %316 = vector.broadcast %cst_169 : f32 to vector<8x128xf32>
    %317 = arith.mulf %316, %315 : vector<8x128xf32>
    %318 = arith.addf %313, %317 : vector<8x128xf32>
    %cst_170 = arith.constant 0.797884583 : f32
    %319 = vector.broadcast %cst_170 : f32 to vector<8x128xf32>
    %320 = arith.mulf %319, %318 : vector<8x128xf32>
    %321 = math.tanh %320 : vector<8x128xf32>
    %cst_171 = arith.constant 1.000000e+00 : f32
    %322 = vector.broadcast %cst_171 : f32 to vector<8x128xf32>
    %323 = arith.addf %322, %321 : vector<8x128xf32>
    %cst_172 = arith.constant 5.000000e-01 : f32
    %324 = vector.broadcast %cst_172 : f32 to vector<8x128xf32>
    %325 = arith.mulf %324, %323 : vector<8x128xf32>
    %326 = arith.mulf %313, %325 : vector<8x128xf32>
    %327 = arith.truncf %326 : vector<8x128xf32> to vector<8x128xbf16>
    %c1_173 = arith.constant 1 : index
    %c0_174 = arith.constant 0 : index
    %c0_175 = arith.constant 0 : index
    %328 = vector.load %arg9[%c1_173, %c0_174, %c0_175] : memref<2x128x32xbf16, #tpu.memory_space<vmem>>, vector<1x128x32xbf16>
    %329 = vector.shape_cast %328 : vector<1x128x32xbf16> to vector<128x32xbf16>
    %cst_176 = arith.constant dense<0.000000e+00> : vector<8x32xf32>
    %330 = tpu.matmul %327, %329, %cst_176 {dimension_numbers = #tpu.dot_dimension_numbers<[1], [0], [0], [1], [0, 0, 1, 1], [], []>} : vector<8x128xbf16>, vector<128x32xbf16>, vector<8x32xf32> -> vector<8x32xf32>
    %331 = arith.addf %286, %330 : vector<8x32xf32>
    %332 = vector.broadcast %181 : vector<1x32xf32> to vector<8x32xf32>
    %333 = arith.addf %331, %332 : vector<8x32xf32>
    %c2_177 = arith.constant 2 : index
    %c0_178 = arith.constant 0 : index
    %334 = vector.load %arg11[%c2_177, %c0_178] : memref<16x32xf32, #tpu.memory_space<vmem>>, vector<1x32xf32>
    %c3_179 = arith.constant 3 : index
    %c0_180 = arith.constant 0 : index
    %335 = vector.load %arg11[%c3_179, %c0_180] : memref<16x32xf32, #tpu.memory_space<vmem>>, vector<1x32xf32>
    %cst_181 = arith.constant dense<0.000000e+00> : vector<8xf32>
    %336 = vector.multi_reduction <add>, %333, %cst_181 [1] : vector<8x32xf32> to vector<8xf32>
    %337 = vector.shape_cast %336 : vector<8xf32> to vector<8x1xf32>
    %cst_182 = arith.constant 3.200000e+01 : f32
    %338 = vector.broadcast %cst_182 : f32 to vector<8x1xf32>
    %339 = arith.divf %337, %338 : vector<8x1xf32>
    %340 = vector.broadcast %339 : vector<8x1xf32> to vector<8x32xf32>
    %341 = arith.subf %333, %340 : vector<8x32xf32>
    %342 = arith.mulf %341, %341 : vector<8x32xf32>
    %cst_183 = arith.constant dense<0.000000e+00> : vector<8xf32>
    %343 = vector.multi_reduction <add>, %342, %cst_183 [1] : vector<8x32xf32> to vector<8xf32>
    %344 = vector.shape_cast %343 : vector<8xf32> to vector<8x1xf32>
    %cst_184 = arith.constant 3.200000e+01 : f32
    %345 = vector.broadcast %cst_184 : f32 to vector<8x1xf32>
    %346 = arith.divf %344, %345 : vector<8x1xf32>
    %cst_185 = arith.constant 9.99999997E-7 : f32
    %347 = vector.broadcast %cst_185 : f32 to vector<8x1xf32>
    %348 = arith.addf %346, %347 : vector<8x1xf32>
    %349 = math.rsqrt %348 : vector<8x1xf32>
    %350 = vector.broadcast %349 : vector<8x1xf32> to vector<8x32xf32>
    %351 = arith.mulf %341, %350 : vector<8x32xf32>
    %352 = vector.broadcast %334 : vector<1x32xf32> to vector<8x32xf32>
    %353 = arith.mulf %351, %352 : vector<8x32xf32>
    %354 = vector.broadcast %335 : vector<1x32xf32> to vector<8x32xf32>
    %355 = arith.addf %353, %354 : vector<8x32xf32>
    %356 = arith.truncf %355 : vector<8x32xf32> to vector<8x32xbf16>
    %c0_186 = arith.constant 0 : index
    %c0_187 = arith.constant 0 : index
    %357 = vector.load %arg10[%c0_186, %c0_187] : memref<32x256xbf16, #tpu.memory_space<vmem>>, vector<32x256xbf16>
    %cst_188 = arith.constant dense<0.000000e+00> : vector<8x256xf32>
    %358 = tpu.matmul %356, %357, %cst_188 {dimension_numbers = #tpu.dot_dimension_numbers<[1], [0], [0], [1], [0, 0, 1, 1], [], []>} : vector<8x32xbf16>, vector<32x256xbf16>, vector<8x256xf32> -> vector<8x256xf32>
    %c0_189 = arith.constant 0 : index
    %c0_190 = arith.constant 0 : index
    %359 = vector.load %arg14[%c0_189, %c0_190] : memref<1x256xf32, #tpu.memory_space<vmem>>, vector<1x256xf32>
    %360 = vector.broadcast %359 : vector<1x256xf32> to vector<8x256xf32>
    %361 = arith.addf %358, %360 : vector<8x256xf32>
    %362 = arith.truncf %361 : vector<8x256xf32> to vector<8x256xbf16>
    %c0_191 = arith.constant 0 : index
    %c0_192 = arith.constant 0 : index
    %363 = vector.load %arg15[%c0_191, %c0_192] : memref<8x256xbf16, #tpu.memory_space<vmem>>, vector<8x256xbf16>
    tpu.vector_store %arg15[%c0_191, %c0_192], %362 {strides = array<i32>} : memref<8x256xbf16, #tpu.memory_space<vmem>>, vector<8x256xbf16>,
    return
  }
  func.func @transform_0(%arg0: i32) -> (i32, i32) {
    %c0_i32 = arith.constant 0 : i32
    %c0_i32_0 = arith.constant 0 : i32
    return %arg0, %c0_i32 : i32, i32
  }
  func.func @transform_1(%arg0: i32) -> (i32, i32) {
    %c0_i32 = arith.constant 0 : i32
    %c0_i32_0 = arith.constant 0 : i32
    return %arg0, %c0_i32 : i32, i32
  }
  func.func @transform_2(%arg0: i32) -> (i32, i32) {
    %c0_i32 = arith.constant 0 : i32
    %c0_i32_0 = arith.constant 0 : i32
    %c0_i32_1 = arith.constant 0 : i32
    return %c0_i32, %c0_i32_0 : i32, i32
  }
  func.func @transform_3(%arg0: i32) -> (i32, i32) {
    %c0_i32 = arith.constant 0 : i32
    %c0_i32_0 = arith.constant 0 : i32
    %c0_i32_1 = arith.constant 0 : i32
    return %c0_i32, %c0_i32_0 : i32, i32
  }
  func.func @transform_4(%arg0: i32) -> (i32, i32) {
    %c0_i32 = arith.constant 0 : i32
    %c0_i32_0 = arith.constant 0 : i32
    %c0_i32_1 = arith.constant 0 : i32
    return %c0_i32, %c0_i32_0 : i32, i32
  }
  func.func @transform_5(%arg0: i32) -> (i32, i32, i32) {
    %c0_i32 = arith.constant 0 : i32
    %c0_i32_0 = arith.constant 0 : i32
    %c0_i32_1 = arith.constant 0 : i32
    %c0_i32_2 = arith.constant 0 : i32
    return %c0_i32, %c0_i32_0, %c0_i32_1 : i32, i32, i32
  }
  func.func @transform_6(%arg0: i32) -> (i32, i32, i32) {
    %c0_i32 = arith.constant 0 : i32
    %c0_i32_0 = arith.constant 0 : i32
    %c0_i32_1 = arith.constant 0 : i32
    %c0_i32_2 = arith.constant 0 : i32
    return %c0_i32, %c0_i32_0, %c0_i32_1 : i32, i32, i32
  }
  func.func @transform_7(%arg0: i32) -> (i32, i32, i32) {
    %c0_i32 = arith.constant 0 : i32
    %c0_i32_0 = arith.constant 0 : i32
    %c0_i32_1 = arith.constant 0 : i32
    %c0_i32_2 = arith.constant 0 : i32
    return %c0_i32, %c0_i32_0, %c0_i32_1 : i32, i32, i32
  }
  func.func @transform_8(%arg0: i32) -> (i32, i32, i32) {
    %c0_i32 = arith.constant 0 : i32
    %c0_i32_0 = arith.constant 0 : i32
    %c0_i32_1 = arith.constant 0 : i32
    %c0_i32_2 = arith.constant 0 : i32
    return %c0_i32, %c0_i32_0, %c0_i32_1 : i32, i32, i32
  }
  func.func @transform_9(%arg0: i32) -> (i32, i32) {
    %c0_i32 = arith.constant 0 : i32
    %c0_i32_0 = arith.constant 0 : i32
    %c0_i32_1 = arith.constant 0 : i32
    return %c0_i32, %c0_i32_0 : i32, i32
  }
  func.func @transform_10(%arg0: i32) -> (i32, i32) {
    %c0_i32 = arith.constant 0 : i32
    %c0_i32_0 = arith.constant 0 : i32
    %c0_i32_1 = arith.constant 0 : i32
    return %c0_i32, %c0_i32_0 : i32, i32
  }
  func.func @transform_11(%arg0: i32) -> (i32, i32) {
    %c0_i32 = arith.constant 0 : i32
    %c0_i32_0 = arith.constant 0 : i32
    %c0_i32_1 = arith.constant 0 : i32
    return %c0_i32, %c0_i32_0 : i32, i32
  }
  func.func @transform_12(%arg0: i32) -> (i32, i32) {
    %c0_i32 = arith.constant 0 : i32
    %c0_i32_0 = arith.constant 0 : i32
    %c0_i32_1 = arith.constant 0 : i32
    return %c0_i32, %c0_i32_0 : i32, i32
  }
  func.func @transform_13(%arg0: i32) -> (i32, i32) {
    %c0_i32 = arith.constant 0 : i32
    %c0_i32_0 = arith.constant 0 : i32
    %c0_i32_1 = arith.constant 0 : i32
    return %c0_i32, %c0_i32_0 : i32, i32
  }
  func.func @transform_14(%arg0: i32) -> (i32, i32) {
    %c0_i32 = arith.constant 0 : i32
    %c0_i32_0 = arith.constant 0 : i32
    return %arg0, %c0_i32 : i32, i32
  }
}

</mosaic_0001>

<bundles_post_ra>
// kernel: omnimae_forward.1
= control target key start
LH: loop header
LB: loop body
LE: loop exit
PB: predicated region body
PF: predicated region fallthrough
CT: control target
= control target key end

     0   :  { %v2882_v1 = vmov 0   ;;  %vm251_vm2 = vcmask 261120   ;;  %v2883_v41 = vmov 0.0   ;;  %vm2884_vm3 = vmmov 0   ;;  %s3482_s4 = inlined_call_operand.vmem [shape: bf16[256,32], index: 4, kind: input, shape index: {}]   ;;  %s3483_s0 = inlined_call_operand.vmem [shape: bf16[8,256], index: 0, kind: input, shape index: {}]   ;;  %s3484_s1 = inlined_call_operand.vmem [shape: f32[8,1], index: 1, kind: input, shape index: {}]   ;;  %s3485_s10 = inlined_call_operand.vmem [shape: f32[16,32], index: 10, kind: input, shape index: {}]   ;;  %s3486_s2 = inlined_call_operand.vmem [shape: f32[8,32], index: 2, kind: input, shape index: {}]   ;;  %s3487_s5 = inlined_call_operand.vmem [shape: bf16[12,32,16], index: 5, kind: input, shape index: {}]   ;;  %s3488_s11 = inlined_call_operand.vmem [shape: f32[12,16], index: 11, kind: input, shape index: {}]   ;;  %s3489_s3 = inlined_call_operand.vmem [shape: f32[8,8], index: 3, kind: input, shape index: {}]   ;;  %s3490_s6 = inlined_call_operand.vmem [shape: bf16[4,16,32], index: 6, kind: input, shape index: {}]   ;;  %s3491_s7 = inlined_call_operand.vmem [shape: bf16[2,32,128], index: 7, kind: input, shape index: {}]   ;;  %s3492_s8 = inlined_call_operand.vmem [shape: bf16[2,128,32], index: 8, kind: input, shape index: {}]   ;;  %s3493_s12 = inlined_call_operand.vmem [shape: f32[2,128], index: 12, kind: input, shape index: {}]   ;;  %s3494_s9 = inlined_call_operand.vmem [shape: bf16[32,256], index: 9, kind: input, shape index: {}]   ;;  %s3495_s13 = inlined_call_operand.vmem [shape: f32[1,256], index: 13, kind: input, shape index: {}]   ;;  %s3496_s14 = inlined_call_operand.vmem [shape: bf16[8,256], index: 14, kind: output, shape index: {}]  }
   0x1   :  { %v2780_v0 = vld [vmem:[%s3482_s4 + $0x78] sm:$0xff]   ;;  %2779 = vset.pattern.permute.xlu0 %v2882_v1  ;;  %v2782_v3 = vld [vmem:[%s3482_s4 + $0x70] sm:$0xff]   ;;  %v2784_v5 = vld [vmem:[%s3482_s4 + $0x68] sm:$0xff]   ;;  %2552 = vmatprep.subr.bf16.mxu1 %v2883_v41  ;;  %vm467_vm4 = vcmask 130048   ;;  %vm531_vm5 = vcmask 1043456   ;;  %vm514_vm6 = vcmask 64512  }
   0x2   :  { %v2781_v2 = vld [vmem:[%s3482_s4 + $0x38] sm:$0xff]   ;;  %2446 = vmatprep.subr.bf16.mxu0 %v2780_v0  ;;  %v2783_v4 = vld [vmem:[%s3482_s4 + $0x30] sm:$0xff]   ;;  %v2785_v6 = vld [vmem:[%s3482_s4 + $0x28] sm:$0xff]   ;;  %2556 = vmatprep.mubr.msk.bf16.mxu1 %vm2884_vm3, %v2883_v41 }
   0x3   :  { %2447 = vmatpush3.bf16.msra.mxu0 %v2781_v2  ;;  %v2786_v7 = vld [vmem:[%s3482_s4 + $0x60] sm:$0xff]   ;;  %v2788_v9 = vld [vmem:[%s3482_s4 + $0x58] sm:$0xff]   ;;  %v2790_v11 = vld [vmem:[%s3482_s4 + $0x50] sm:$0xff]  }
   0x4   :  { %2448 = vmatprep.subr.bf16.mxu0 %v2782_v3  ;;  %v2787_v8 = vld [vmem:[%s3482_s4 + $0x20] sm:$0xff]   ;;  %v2789_v10 = vld [vmem:[%s3482_s4 + $0x18] sm:$0xff]   ;;  %v2791_v16 = vld [vmem:[%s3482_s4 + $0x10] sm:$0xff]  }
   0x5   :  { %v48_v12 = vld [vmem:[%s3483_s0] sm:$0xff]  ;;  %v2792_v17 = vld [vmem:[%s3482_s4 + $0x48] sm:$0xff]   ;;  %v2799_v42 = vld [vmem:[%s3487_s5 + $0x38] sm:$0xff]  }
   0x6   :  { %v229_v13 = vld [vmem:[%s3484_s1] sm:$0xff]  ;;  %v2249_v14 = vcombine.high %v48_v12, %v48_v12  ;;  %v2793_v18 = vld [vmem:[%s3482_s4 + $0x8] sm:$0xff]   ;;  %v2248_v21 = vcombine.low %v48_v12, %v48_v12  ;;  %v2801_v44 = vld [vmem:[%s3487_s5 + $0x30] sm:$0xff]  }
   0x7   :  { %2449 = vmatpush3.bf16.msra.mxu0 %v2783_v4  ;;  %vm230_vm0 = vcmp.gt.f32.partialorder %v229_v13, 0.5  ;;  %v2794_v19 = vld [vmem:[%s3482_s4 + $0x40] sm:$0xff]   ;;  %v2798_v40 = vld [vmem:[%s3487_s5 + $0x8] sm:$0xff]  }
   0x8   :  { %2450 = vmatprep.subr.bf16.mxu0 %v2784_v5  ;;  %v232_v15 = vsel %vm230_vm0, 1, %v2882_v1  ;;  %221 = vmatprep.mubr.bf16.mxu0 %v2249_v14  ;;  %v2795_v20 = vld [vmem:[%s3482_s4] sm:$0xff]   ;;  %v2802_v54 = vld [vmem:[%s3487_s5 + $0x28] sm:$0xff]  }
   0x9   :  { %234 = vperm.xlu0 %2779, %v232_v15   ;;  %v2247_v24 = vld [vmem:[%s3485_s10] ss:$0 sm:$0xff]  ;;  %v2266_v28 = vld [vmem:[%s3485_s10 + $0x1] ss:$0 sm:$0xff]  ;;  %2553 = vmatpush3.bf16.msra.mxu1 %v2798_v40  ;;  %v2267_v49 = vld [vmem:[%s3485_s10 + $0x4] ss:$0 sm:$0xff] }
   0xa   :  { %v242_v30 = vld [vmem:[%s3486_s2] sm:$0xff]  ;;  %2554 = vmatprep.subr.bf16.mxu1 %v2883_v41  ;;  %v2804_v57 = vld [vmem:[%s3487_s5 + $0x48] sm:$0xff]  }
   0xb   :  { %2451 = vmatpush3.bf16.msra.mxu0 %v2785_v6  ;;  %v2800_v43 = vld [vmem:[%s3487_s5] sm:$0xff]  }
   0xc   :  { %2452 = vmatprep.subr.bf16.mxu0 %v2786_v7  ;;  %v2268_v51 = vld [vmem:[%s3485_s10 + $0x5] ss:$0 sm:$0xff]  ;;  %v2303_v59 = vld [vmem:[%s3488_s11 + $0x3] ss:$0 sm:$0xff]  ;;  %v2269_v13 = vld [vmem:[%s3488_s11] ss:$0 sm:$0xff] }
   0xd   :  { %2555 = vmatpush3.bf16.msra.mxu1 %v2800_v43  ;;  %v2803_v56 = vld [vmem:[%s3487_s5 + $0x20] sm:$0xff]  }
   0xe   :  { %2560 = vmatprep.subr.bf16.mxu1 %v2883_v41  ;;  %v2805_v58 = vld [vmem:[%s3487_s5 + $0x40] sm:$0xff]  }
   0xf   :  { %2453 = vmatpush3.bf16.msra.mxu0 %v2787_v8  ;;  %v2277_v8 = vld [vmem:[%s3488_s11 + $0x2] ss:$0 sm:$0xff] }
  0x10   :  { %2454 = vmatprep.subr.bf16.mxu0 %v2788_v9 }
  0x13   :  { %2455 = vmatpush3.bf16.msra.mxu0 %v2789_v10 }
  0x14   :  { %2456 = vmatprep.subr.bf16.mxu0 %v2790_v11 }
  0x17   :  { %2457 = vmatpush3.bf16.msra.mxu0 %v2791_v16 }
  0x18   :  { %2458 = vmatprep.subr.bf16.mxu0 %v2792_v17  ;;  %v2285_v17 = vld [vmem:[%s3488_s11 + $0x4] ss:$0 sm:$0xff] }
  0x1b   :  { %2459 = vmatpush3.bf16.msra.mxu0 %v2793_v18 }
  0x1c   :  { %2460 = vmatprep.subr.bf16.mxu0 %v2794_v19 }
  0x1f   :  { %2461 = vmatpush3.bf16.msra.mxu0 %v2795_v20 }
  0x20   :  { %2596 = vmatprep.subr.bf16.mxu0 %v2883_v41 }
  0x22   :  { %222 = vmatmul.mubr.bf16.vlgmr.msra.gmra.mxu0 %v2248_v21 }
  0x23   :  { %2597 = vmatpush3.bf16.msra.mxu0 %v2799_v42  ;;  %2600 = vmatprep.mubr.msk.bf16.mxu0 %vm2884_vm3, %v2883_v41 }
  0x24   :  { %2598 = vmatprep.subr.bf16.mxu0 %v2883_v41 }
  0x27   :  { %2599 = vmatpush3.bf16.msra.mxu0 %v2801_v44  ;;  %v2806_v44 = vld [vmem:[%s3487_s5 + $0x18] sm:$0xff]  }
  0x28   :  { %2612 = vmatprep.subr.bf16.mxu0 %v2883_v41 }
  0x84   :  { %v235_v23 = vpop.permute.xlu0 %234 }
  0x85   :  { %vm236_vm1 = vcmp.eq.s32.totalorder %v235_v23, 1 }
  0xe2   :  { %v2462_v22 = vpop.f32.mrf.mxu0 }
  0xe4   :  { %v2463_v25 = vpop.f32.mrf.mxu0 }
  0xe5   :  { %v2464_v26 = vadd.f32 %v2463_v25, %v2462_v22 }
  0xe6   :  { %v2465_v27 = vpop.f32.mrf.mxu0 }
  0xe7   :  { %v224_v29 = vadd.f32 %v2464_v26, %v2247_v24  ;;  %v3117_v27 = vld [vmem:[%s3489_s3] sm:$0xff] }
  0xe8   :  { %v2466_v31 = vpop.f32.mrf.mxu0 }
  0xe9   :  { %v241_v32 = vsel %vm236_vm1, %v2266_v28, %v224_v29 }
  0xea   :  { %v3025_v33 = vadd.f32 %v242_v30, %v241_v32 }
  0xec   :  { %v252_v34 = vsel %vm251_vm2, %v3025_v33, 0.0 }
  0xed   :  { %253 = vadd.xlane.f32.xlu0 %v252_v34 }
 0x176   :  { %v254_v35 = vpop.xlane.xlu0 %253 }
 0x177   :  { %v256_v36 = vmul.f32 0.03125, %v254_v35 }
 0x179   :  { %v257_v37 = vsub.f32 %v3025_v33, %v256_v36 }
 0x17b   :  { %v258_v38 = vmul.f32 %v257_v37, %v257_v37 }
 0x17d   :  { %v259_v39 = vsel %vm251_vm2, %v258_v38, 0.0 }
 0x17e   :  { %260 = vadd.xlane.f32.xlu1 %v259_v39 }
 0x207   :  { %v261_v45 = vpop.xlane.xlu1 %260 }
 0x208   :  { %v262_v46 = vmul.f32 0.03125, %v261_v45 }
 0x20a   :  { %v263_v47 = vadd.f32 1e-06, %v262_v46  ;;  %v2807_v46 = vld [vmem:[%s3487_s5 + $0x10] sm:$0xff]  }
 0x20c   :  { %2852 = vrsqrt.f32 %v263_v47  ;;  %v2808_v47 = vld [vmem:[%s3487_s5 + $0x58] sm:$0xff]  }
 0x219   :  { %v2853_v48 = vpop.eup %2852 }
 0x21a   :  { %v265_v50 = vmul.f32 %v2853_v48, %v257_v37  ;;  %v2809_v48 = vld [vmem:[%s3487_s5 + $0x50] sm:$0xff]  }
 0x21c   :  { %v270_v52 = vmul.f32 %v2267_v49, %v265_v50 }
 0x21e   :  { %v275_v53 = vadd.f32 %v2268_v51, %v270_v52 }
 0x220   :  { %v3062_v55 = vpack.c.bf16 %v275_v53, %v275_v53  ;;  %v2295_v53 = vld [vmem:[%s3488_s11 + $0x1] ss:$0 sm:$0xff] }
 0x222   :  { %2557 = vmatmul.mubr.msk.bf16.vlgmr.msra.gmra.mxu1 %vm251_vm2, %v3062_v55  ;;  %2601 = vmatmul.mubr.msk.bf16.vlgmr.msra.gmra.mxu0 %vm251_vm2, %v3062_v55 }
 0x223   :  { %2561 = vmatpush3.bf16.msra.mxu1 %v2802_v54  ;;  %2564 = vmatprep.mubr.msk.bf16.mxu1 %vm2884_vm3, %v2883_v41 }
 0x224   :  { %2562 = vmatprep.subr.bf16.mxu1 %v2883_v41  ;;  %2614 = vmatprep.mubr.msk.bf16.mxu0 %vm2884_vm3, %v2883_v41 }
 0x227   :  { %2563 = vmatpush3.bf16.msra.mxu1 %v2803_v56 }
 0x228   :  { %2568 = vmatprep.subr.bf16.mxu1 %v2883_v41 }
 0x22a   :  { %2565 = vmatmul.mubr.msk.bf16.vlgmr.msra.gmra.mxu1 %vm251_vm2, %v3062_v55 }
 0x22b   :  { %2569 = vmatpush3.bf16.msra.mxu1 %v2804_v57  ;;  %2572 = vmatprep.mubr.msk.bf16.mxu1 %vm2884_vm3, %v2883_v41 }
 0x22c   :  { %2570 = vmatprep.subr.bf16.mxu1 %v2883_v41 }
 0x22f   :  { %2571 = vmatpush3.bf16.msra.mxu1 %v2805_v58 }
 0x230   :  { %2576 = vmatprep.subr.bf16.mxu1 %v2883_v41 }
 0x232   :  { %2573 = vmatmul.mubr.msk.bf16.vlgmr.msra.gmra.mxu1 %vm251_vm2, %v3062_v55 }
 0x233   :  { %2578 = vmatprep.mubr.msk.bf16.mxu1 %vm2884_vm3, %v2883_v41 }
 0x2e2   :  { %v335_v60 = vpop.f32.mrf.mxu1  ;;  %v696_v61 = vpop.f32.mrf.mxu0 }
 0x2e3   :  { %v697_v62 = vadd.f32 %v2303_v59, %v696_v61  ;;  %v336_v18 = vadd.f32 %v2269_v13, %v335_v60 }
 0x2e4   :  { %v2558_v63 = vpop.f32.mrf.mxu1  ;;  %v2602_v0 = vpop.f32.mrf.mxu0 }
 0x2e5   :  { %v765_v2 = vpack.c.bf16 %v697_v62, %v697_v62  ;;  %v465_v22 = vpack.c.bf16 %v336_v18, %v336_v18 }
 0x2e6   :  { %v338_v3 = vpop.f32.mrf.mxu1  ;;  %v699_v4 = vpop.f32.mrf.mxu0 }
 0x2e7   :  { %v770_v5 = vsel %vm467_vm4, %v765_v2, 0 }
 0x2e8   :  { %v2559_v6 = vpop.f32.mrf.mxu1  ;;  %v2603_v7 = vpop.f32.mrf.mxu0  ;;  %2613 = vmatpush3.bf16.xpose.msra.mxu0 %v770_v5 }
 0x2e9   :  { %2624 = vmatprep.subr.bf16.mxu0 %v2883_v41 }
 0x2ea   :  { %v397_v9 = vpop.f32.mrf.mxu1 }
 0x2eb   :  { %v398_v10 = vadd.f32 %v2277_v8, %v397_v9 }
 0x2ec   :  { %v2566_v11 = vpop.f32.mrf.mxu1 }
 0x2ed   :  { %v466_v12 = vpack.c.bf16 %v398_v10, %v398_v10 }
 0x2ee   :  { %v400_v14 = vpop.f32.mrf.mxu1 }
 0x2ef   :  { %v472_v15 = vsel %vm467_vm4, %v466_v12, 0 }
 0x2f0   :  { %v2567_v16 = vpop.f32.mrf.mxu1  ;;  %2577 = vmatpush3.bf16.xpose.msra.mxu1 %v472_v15 }
 0x2f1   :  { %2582 = vmatprep.subr.bf16.mxu1 %v2883_v41  ;;  %v2811_v16 = vld [vmem:[%s3490_s6 + $0x8] sm:$0xff]  }
 0x2f2   :  { %v459_v19 = vpop.f32.mrf.mxu1 }
 0x2f3   :  { %v460_v20 = vadd.f32 %v2285_v17, %v459_v19 }
 0x2f4   :  { %v2574_v21 = vpop.f32.mrf.mxu1 }
 0x2f5   :  { %v527_v23 = vpack.c.bf16 %v460_v20, %v460_v20  ;;  %v2810_v20 = vld [vmem:[%s3490_s6] sm:$0xff]  }
 0x2f6   :  { %v462_v24 = vpop.f32.mrf.mxu1 }
 0x2f7   :  { %v533_v25 = vsel %vm531_vm5, %v527_v23, 0  ;;  %2579 = vmatmul.mubr.msk.bf16.vlgmr.msra.gmra.mxu1 %vm467_vm4, %v465_v22 }
 0x2f8   :  { %v2575_v26 = vpop.f32.mrf.mxu1  ;;  %2583 = vmatpush3.bf16.msra.mxu1 %v533_v25  ;;  %2584 = vmatprep.mubr.msk.bf16.mxu1 %vm2884_vm3, %v2883_v41 }
 0x2f9   :  { %2588 = vmatprep.subr.bf16.mxu1 %v2883_v41 }
 0x3b7   :  { %v508_v28 = vpop.f32.mrf.mxu1 }
 0x3b8   :  { %v509_v29 = vadd.f32 %v508_v28, %v3117_v27 }
 0x3b9   :  { %v2580_v30 = vpop.f32.mrf.mxu1 }
 0x3ba   :  { %v515_v31 = vsel %vm514_vm6, %v509_v29, -inf }
 0x3bb   :  { %516 = vmax.xlane.f32.xlu1 %v515_v31  ;;  %v511_v32 = vpop.f32.mrf.mxu1 }
 0x3bd   :  { %v2581_v34 = vpop.f32.mrf.mxu1 }
 0x444   :  { %v517_v35 = vpop.xlane.xlu1 %516 }
 0x445   :  { %v518_v36 = vsub.f32 %v509_v29, %v517_v35 }
 0x447   :  { %v519_v37 = vmul.f32 1.442695, %v518_v36  ;;  %v2323_v36 = vld [vmem:[%s3485_s10 + $0x6] ss:$0 sm:$0xff] }
 0x449   :  { %2854 = vpow2.f32 %v519_v37 }
 0x456   :  { %v2855_v38 = vpop.eup %2854 }
 0x457   :  { %v521_v39 = vsel %vm514_vm6, %v2855_v38, 0.0 }
 0x458   :  { %522 = vadd.xlane.f32.xlu1 %v521_v39 }
 0x4e1   :  { %v523_v40 = vpop.xlane.xlu1 %522 }
 0x4e2   :  { %2856 = vrcp.f32 %v523_v40 }
 0x4ef   :  { %v2857_v42 = vpop.eup %2856 }
 0x4f0   :  { %v525_v43 = vmul.f32 %v2857_v42, %v2855_v38 }
 0x4f2   :  { %v526_v45 = vpack.c.bf16 %v525_v43, %v525_v43 }
 0x4f4   :  { %2585 = vmatmul.mubr.msk.bf16.vlgmr.msra.gmra.mxu1 %vm514_vm6, %v526_v45 }
 0x4f5   :  { %2589 = vmatpush3.bf16.msra.mxu1 %v2806_v44  ;;  %2592 = vmatprep.mubr.msk.bf16.mxu1 %vm2884_vm3, %v2883_v41 }
 0x4f6   :  { %2590 = vmatprep.subr.bf16.mxu1 %v2883_v41 }
 0x4f9   :  { %2591 = vmatpush3.bf16.msra.mxu1 %v2807_v46 }
 0x4fa   :  { %2604 = vmatprep.subr.bf16.mxu1 %v2883_v41 }
 0x4fc   :  { %2593 = vmatmul.mubr.msk.bf16.vlgmr.msra.gmra.mxu1 %vm251_vm2, %v3062_v55 }
 0x4fd   :  { %2605 = vmatpush3.bf16.msra.mxu1 %v2808_v47  ;;  %2608 = vmatprep.mubr.msk.bf16.mxu1 %vm2884_vm3, %v2883_v41 }
 0x4fe   :  { %2606 = vmatprep.subr.bf16.mxu1 %v2883_v41 }
 0x501   :  { %2607 = vmatpush3.bf16.msra.mxu1 %v2809_v48 }
 0x502   :  { %2618 = vmatprep.subr.bf16.mxu1 %v2883_v41 }
 0x504   :  { %2609 = vmatmul.mubr.msk.bf16.vlgmr.msra.gmra.mxu1 %vm251_vm2, %v3062_v55  ;;  %v2311_v55 = vld [vmem:[%s3488_s11 + $0x5] ss:$0 sm:$0xff] }
 0x505   :  { %2620 = vmatprep.mubr.msk.bf16.mxu1 %vm2884_vm3, %v2883_v41 }
 0x5b4   :  { %v569_v49 = vpop.f32.mrf.mxu1 }
 0x5b5   :  { %v575_v22 = vpack.c.bf16 %v569_v49, %v569_v49  ;;  %v2813_v49 = vld [vmem:[%s3491_s7] sm:$0xff]  }
 0x5b6   :  { %v2586_v50 = vpop.f32.mrf.mxu1 }
 0x5b8   :  { %v572_v51 = vpop.f32.mrf.mxu1 }
 0x5ba   :  { %v2587_v52 = vpop.f32.mrf.mxu1 }
 0x5bc   :  { %v634_v54 = vpop.f32.mrf.mxu1 }
 0x5bd   :  { %v635_v56 = vadd.f32 %v2295_v53, %v634_v54  ;;  %v2324_v54 = vld [vmem:[%s3485_s10 + $0x7] ss:$0 sm:$0xff] }
 0x5be   :  { %v2594_v57 = vpop.f32.mrf.mxu1 }
 0x5bf   :  { %v764_v58 = vpack.c.bf16 %v635_v56, %v635_v56  ;;  %v2325_v57 = vld [vmem:[%s3485_s10 + $0x8] ss:$0 sm:$0xff] }
 0x5c0   :  { %v637_v59 = vpop.f32.mrf.mxu1 }
 0x5c1   :  { %2615 = vmatmul.mubr.msk.bf16.vlgmr.msra.gmra.mxu0 %vm467_vm4, %v764_v58 }
 0x5c2   :  { %v2595_v60 = vpop.f32.mrf.mxu1  ;;  %2626 = vmatprep.mubr.msk.bf16.mxu0 %vm2884_vm3, %v2883_v41  ;;  %2625 = vmatpush3.bf16.msra.mxu0 %v2811_v16 }
 0x5c3   :  { %2636 = vmatprep.subr.bf16.mxu0 %v2883_v41 }
 0x5c4   :  { %v758_v61 = vpop.f32.mrf.mxu1 }
 0x5c5   :  { %v759_v62 = vadd.f32 %v2311_v55, %v758_v61  ;;  %v2814_v55 = vld [vmem:[%s3492_s8 + $0x38] sm:$0xff]   ;;  %v2815_v61 = vld [vmem:[%s3492_s8 + $0x30] sm:$0xff]  }
 0x5c6   :  { %v2610_v63 = vpop.f32.mrf.mxu1 }
 0x5c7   :  { %v824_v0 = vpack.c.bf16 %v759_v62, %v759_v62  ;;  %v2816_v62 = vld [vmem:[%s3492_s8 + $0x28] sm:$0xff]   ;;  %v2817_v63 = vld [vmem:[%s3492_s8 + $0x20] sm:$0xff]  }
 0x5c8   :  { %v761_v2 = vpop.f32.mrf.mxu1 }
 0x5c9   :  { %v829_v3 = vsel %vm531_vm5, %v824_v0, 0  ;;  %v2818_v0 = vld [vmem:[%s3492_s8 + $0x18] sm:$0xff]   ;;  %v2819_v2 = vld [vmem:[%s3492_s8 + $0x10] sm:$0xff]  }
 0x5ca   :  { %v2611_v4 = vpop.f32.mrf.mxu1  ;;  %2619 = vmatpush3.bf16.msra.mxu1 %v829_v3  ;;  %v2820_v3 = vld [vmem:[%s3492_s8 + $0x8] sm:$0xff]  }
 0x5cb   :  { %2630 = vmatprep.subr.bf16.mxu1 %v2883_v41  ;;  %v2821_v4 = vld [vmem:[%s3492_s8] sm:$0xff]  }
 0x681   :  { %v806_v5 = vpop.f32.mrf.mxu0 }
 0x682   :  { %v807_v6 = vadd.f32 %v806_v5, %v3117_v27  ;;  %v2326_v5 = vld [vmem:[%s3493_s12] ss:$0 sm:$0xff] }
 0x683   :  { %v2616_v7 = vpop.f32.mrf.mxu0 }
 0x684   :  { %v812_v8 = vsel %vm514_vm6, %v807_v6, -inf }
 0x685   :  { %813 = vmax.xlane.f32.xlu1 %v812_v8  ;;  %v809_v9 = vpop.f32.mrf.mxu0 }
 0x687   :  { %v2617_v10 = vpop.f32.mrf.mxu0 }
 0x70e   :  { %v814_v11 = vpop.xlane.xlu1 %813 }
 0x70f   :  { %v815_v12 = vsub.f32 %v807_v6, %v814_v11 }
 0x711   :  { %v816_v13 = vmul.f32 1.442695, %v815_v12 }
 0x713   :  { %2858 = vpow2.f32 %v816_v13 }
 0x720   :  { %v2859_v14 = vpop.eup %2858 }
 0x721   :  { %v818_v15 = vsel %vm514_vm6, %v2859_v14, 0.0 }
 0x722   :  { %819 = vadd.xlane.f32.xlu1 %v818_v15 }
 0x7ab   :  { %v820_v17 = vpop.xlane.xlu1 %819 }
 0x7ac   :  { %2860 = vrcp.f32 %v820_v17 }
 0x7b9   :  { %v2861_v18 = vpop.eup %2860 }
 0x7ba   :  { %v822_v19 = vmul.f32 %v2861_v18, %v2859_v14 }
 0x7bc   :  { %v823_v21 = vpack.c.bf16 %v822_v19, %v822_v19 }
 0x7be   :  { %2621 = vmatmul.mubr.msk.bf16.vlgmr.msra.gmra.mxu1 %vm514_vm6, %v823_v21  ;;  %v2338_v21 = vld [vmem:[%s3485_s10 + $0x9] ss:$0 sm:$0xff] }
 0x7bf   :  { %2631 = vmatpush3.bf16.msra.mxu1 %v2810_v20  ;;  %2632 = vmatprep.mubr.msk.bf16.mxu1 %vm2884_vm3, %v2883_v41 }
 0x7c0   :  { %2644 = vmatprep.subr.bf16.mxu1 %v2883_v41 }
 0x7c6   :  { %2633 = vmatmul.mubr.msk.bf16.vlgmr.msra.gmra.mxu1 %vm467_vm4, %v575_v22 }
 0x7c7   :  { %2660 = vmatprep.mubr.msk.bf16.mxu1 %vm2884_vm3, %v2883_v41  ;;  %2645 = vmatpush3.bf16.msra.mxu1 %v2814_v55 }
 0x7c8   :  { %2646 = vmatprep.subr.bf16.mxu1 %v2883_v41 }
 0x7cb   :  { %2647 = vmatpush3.bf16.msra.mxu1 %v2815_v61  ;;  %v2345_v61 = vld [vmem:[%s3488_s11 + $0x6] ss:$0 sm:$0xff] }
 0x7cc   :  { %2648 = vmatprep.subr.bf16.mxu1 %v2883_v41 }
 0x7cf   :  { %2649 = vmatpush3.bf16.msra.mxu1 %v2816_v62 }
 0x7d0   :  { %2650 = vmatprep.subr.bf16.mxu1 %v2883_v41 }
 0x7d3   :  { %2651 = vmatpush3.bf16.msra.mxu1 %v2817_v63 }
 0x7d4   :  { %2652 = vmatprep.subr.bf16.mxu1 %v2883_v41 }
 0x7d7   :  { %2653 = vmatpush3.bf16.msra.mxu1 %v2818_v0 }
 0x7d8   :  { %2654 = vmatprep.subr.bf16.mxu1 %v2883_v41 }
 0x7db   :  { %2655 = vmatpush3.bf16.msra.mxu1 %v2819_v2  ;;  %v2361_v2 = vld [vmem:[%s3488_s11 + $0xa] ss:$0 sm:$0xff] }
 0x7dc   :  { %2656 = vmatprep.subr.bf16.mxu1 %v2883_v41 }
 0x7df   :  { %2657 = vmatpush3.bf16.msra.mxu1 %v2820_v3 }
 0x7e0   :  { %2658 = vmatprep.subr.bf16.mxu1 %v2883_v41 }
 0x7e3   :  { %2659 = vmatpush3.bf16.msra.mxu1 %v2821_v4 }
 0x7e4   :  { %2694 = vmatprep.subr.bf16.mxu1 %v2883_v41 }
 0x87e   :  { %v865_v23 = vpop.f32.mrf.mxu1 }
 0x87f   :  { %v871_v24 = vpack.c.bf16 %v865_v23, %v865_v23 }
 0x880   :  { %v2622_v25 = vpop.f32.mrf.mxu1 }
 0x881   :  { %2627 = vmatmul.mubr.msk.bf16.vlgmr.msra.gmra.mxu0 %vm467_vm4, %v871_v24 }
 0x882   :  { %v868_v26 = vpop.f32.mrf.mxu1  ;;  %2640 = vmatprep.mubr.msk.bf16.mxu0 %vm2884_vm3, %v2883_v41 }
 0x884   :  { %v2623_v28 = vpop.f32.mrf.mxu1 }
 0x886   :  { %v967_v29 = vpop.f32.mrf.mxu1 }
 0x888   :  { %v2634_v30 = vpop.f32.mrf.mxu1 }
 0x88a   :  { %v970_v31 = vpop.f32.mrf.mxu1 }
 0x88c   :  { %v2635_v32 = vpop.f32.mrf.mxu1 }
 0x941   :  { %v918_v34 = vpop.f32.mrf.mxu0 }
 0x942   :  { %v968_v35 = vadd.f32 %v967_v29, %v918_v34 }
 0x943   :  { %v2628_v37 = vpop.f32.mrf.mxu0 }
 0x944   :  { %v973_v38 = vadd.f32 %v968_v35, %v3025_v33  ;;  %v2812_v33 = vld [vmem:[%s3491_s7 + $0x8] sm:$0xff]   ;;  %v2823_v37 = vld [vmem:[%s3487_s5 + $0x60] sm:$0xff]  }
 0x945   :  { %v921_v39 = vpop.f32.mrf.mxu0  ;;  %2637 = vmatpush3.bf16.msra.mxu0 %v2812_v33 }
 0x946   :  { %v3184_v40 = vadd.f32 %v2323_v36, %v973_v38  ;;  %2638 = vmatprep.subr.bf16.mxu0 %v2883_v41  ;;  %v2822_v36 = vld [vmem:[%s3487_s5 + $0x68] sm:$0xff]  }
 0x947   :  { %v2629_v42 = vpop.f32.mrf.mxu0 }
 0x948   :  { %v979_v43 = vsel %vm251_vm2, %v3184_v40, 0.0 }
 0x949   :  { %980 = vadd.xlane.f32.xlu1 %v979_v43  ;;  %2639 = vmatpush3.bf16.msra.mxu0 %v2813_v49  ;;  %v2339_v43 = vld [vmem:[%s3485_s10 + $0xa] ss:$0 sm:$0xff]  ;;  %v2825_v49 = vld [vmem:[%s3487_s5 + $0x80] sm:$0xff]  }
 0x94a   :  { %2664 = vmatprep.subr.bf16.mxu0 %v2883_v41 }
 0x9d2   :  { %v981_v44 = vpop.xlane.xlu1 %980 }
 0x9d3   :  { %v982_v45 = vmul.f32 0.03125, %v981_v44 }
 0x9d5   :  { %v983_v46 = vsub.f32 %v3184_v40, %v982_v45  ;;  %v2340_v45 = vld [vmem:[%s3485_s10 + $0xb] ss:$0 sm:$0xff] }
 0x9d7   :  { %v984_v47 = vmul.f32 %v983_v46, %v983_v46 }
 0x9d9   :  { %v985_v48 = vsel %vm251_vm2, %v984_v47, 0.0 }
 0x9da   :  { %986 = vadd.xlane.f32.xlu1 %v985_v48  ;;  %v2824_v48 = vld [vmem:[%s3487_s5 + $0x88] sm:$0xff]  }
 0xa63   :  { %v987_v50 = vpop.xlane.xlu1 %986 }
 0xa64   :  { %v988_v51 = vmul.f32 0.03125, %v987_v50  ;;  %v2826_v50 = vld [vmem:[%s3487_s5 + $0xa8] sm:$0xff]  }
 0xa66   :  { %v989_v52 = vadd.f32 1e-06, %v988_v51  ;;  %v2827_v51 = vld [vmem:[%s3487_s5 + $0xa0] sm:$0xff]  }
 0xa68   :  { %2862 = vrsqrt.f32 %v989_v52 }
 0xa75   :  { %v2863_v53 = vpop.eup %2862 }
 0xa76   :  { %v991_v56 = vmul.f32 %v2863_v53, %v983_v46 }
 0xa78   :  { %v996_v58 = vmul.f32 %v2324_v54, %v991_v56 }
 0xa7a   :  { %v1001_v59 = vadd.f32 %v2325_v57, %v996_v58  ;;  %v2353_v57 = vld [vmem:[%s3488_s11 + $0x8] ss:$0 sm:$0xff] }
 0xa7c   :  { %v1002_v60 = vpack.c.bf16 %v1001_v59, %v1001_v59 }
 0xa7e   :  { %2641 = vmatmul.mubr.msk.bf16.vlgmr.msra.gmra.mxu0 %vm251_vm2, %v1002_v60 }
 0xa7f   :  { %2668 = vmatprep.mubr.msk.bf16.mxu0 %vm2884_vm3, %v2883_v41  ;;  %2665 = vmatpush3.bf16.msra.mxu0 %v2822_v36 }
 0xa80   :  { %2666 = vmatprep.subr.bf16.mxu0 %v2883_v41 }
 0xa83   :  { %2667 = vmatpush3.bf16.msra.mxu0 %v2823_v37 }
 0xa84   :  { %2672 = vmatprep.subr.bf16.mxu0 %v2883_v41 }
 0xb3e   :  { %v1061_v6 = vpop.f32.mrf.mxu0 }
 0xb3f   :  { %v1062_v7 = vadd.f32 %v2326_v5, %v1061_v6 }
 0xb40   :  { %v2642_v8 = vpop.f32.mrf.mxu0 }
 0xb41   :  { %v1067_v9 = vmul.f32 %v1062_v7, %v1062_v7 }
 0xb42   :  { %v1064_v10 = vpop.f32.mrf.mxu0 }
 0xb43   :  { %v1068_v11 = vmul.f32 %v1067_v9, %v1062_v7 }
 0xb44   :  { %v2643_v12 = vpop.f32.mrf.mxu0 }
 0xb45   :  { %v1069_v13 = vmul.f32 0.044715, %v1068_v11 }
 0xb47   :  { %v1070_v14 = vadd.f32 %v1069_v13, %v1062_v7  ;;  %v2829_v13 = vld [vmem:[%s3487_s5 + $0x70] sm:$0xff]  }
 0xb49   :  { %v1071_v15 = vmul.f32 0.7978846, %v1070_v14  ;;  %v2830_v14 = vld [vmem:[%s3487_s5 + $0xb8] sm:$0xff]  }
 0xb4b   :  { %2864 = vtanh.f32 %v1071_v15  ;;  %v2831_v15 = vld [vmem:[%s3487_s5 + $0xb0] sm:$0xff]  }
 0xb58   :  { %v2865_v16 = vpop.eup %2864 }
 0xb59   :  { %v1073_v17 = vadd.f32 1.0, %v2865_v16 }
 0xb5b   :  { %v1074_v18 = vmul.f32 0.5, %v1073_v17 }
 0xb5d   :  { %v1075_v19 = vmul.f32 %v1074_v18, %v1062_v7  ;;  %v2828_v7 = vld [vmem:[%s3487_s5 + $0x78] sm:$0xff]  }
 0xb5f   :  { %v1076_v20 = vpack.c.bf16 %v1075_v19, %v1075_v19 }
 0xb61   :  { %2661 = vmatmul.mubr.bf16.vlgmr.msra.gmra.mxu1 %v1076_v20 }
 0xb62   :  { %2696 = vmatprep.mubr.msk.bf16.mxu1 %vm2884_vm3, %v2883_v41 }
 0xc21   :  { %v1175_v22 = vpop.f32.mrf.mxu1 }
 0xc22   :  { %v1181_v23 = vadd.f32 %v1175_v22, %v3184_v40 }
 0xc23   :  { %v2662_v24 = vpop.f32.mrf.mxu1 }
 0xc24   :  { %v3248_v25 = vadd.f32 %v2338_v21, %v1181_v23 }
 0xc25   :  { %v1178_v26 = vpop.f32.mrf.mxu1 }
 0xc26   :  { %v1193_v28 = vsel %vm251_vm2, %v3248_v25, 0.0 }
 0xc27   :  { %1194 = vadd.xlane.f32.xlu1 %v1193_v28  ;;  %v2663_v29 = vpop.f32.mrf.mxu1  ;;  %v2389_v28 = vld [vmem:[%s3488_s11 + $0xb] ss:$0 sm:$0xff] }
 0xcb0   :  { %v1195_v30 = vpop.xlane.xlu1 %1194 }
 0xcb1   :  { %v1196_v31 = vmul.f32 0.03125, %v1195_v30 }
 0xcb3   :  { %v1197_v32 = vsub.f32 %v3248_v25, %v1196_v31 }
 0xcb5   :  { %v1198_v34 = vmul.f32 %v1197_v32, %v1197_v32 }
 0xcb7   :  { %v1199_v35 = vsel %vm251_vm2, %v1198_v34, 0.0 }
 0xcb8   :  { %1200 = vadd.xlane.f32.xlu1 %v1199_v35 }
 0xd41   :  { %v1201_v38 = vpop.xlane.xlu1 %1200 }
 0xd42   :  { %v1202_v39 = vmul.f32 0.03125, %v1201_v38 }
 0xd44   :  { %v1203_v40 = vadd.f32 1e-06, %v1202_v39 }
 0xd46   :  { %2866 = vrsqrt.f32 %v1203_v40 }
 0xd53   :  { %v2867_v42 = vpop.eup %2866 }
 0xd54   :  { %v1205_v44 = vmul.f32 %v2867_v42, %v1197_v32 }
 0xd56   :  { %v1210_v46 = vmul.f32 %v2339_v43, %v1205_v44 }
 0xd58   :  { %v1215_v47 = vadd.f32 %v2340_v45, %v1210_v46  ;;  %v2832_v46 = vld [vmem:[%s3487_s5 + $0x98] sm:$0xff]  }
 0xd5a   :  { %v3271_v33 = vpack.c.bf16 %v1215_v47, %v1215_v47 }
 0xd5c   :  { %2669 = vmatmul.mubr.msk.bf16.vlgmr.msra.gmra.mxu0 %vm251_vm2, %v3271_v33 }
 0xd5d   :  { %2673 = vmatpush3.bf16.msra.mxu0 %v2824_v48  ;;  %2676 = vmatprep.mubr.msk.bf16.mxu0 %vm2884_vm3, %v2883_v41  ;;  %v2833_v48 = vld [vmem:[%s3487_s5 + $0x90] sm:$0xff]  }
 0xd5e   :  { %2674 = vmatprep.subr.bf16.mxu0 %v2883_v41 }
 0xd61   :  { %2675 = vmatpush3.bf16.msra.mxu0 %v2825_v49 }
 0xd62   :  { %2680 = vmatprep.subr.bf16.mxu0 %v2883_v41 }
 0xd64   :  { %2677 = vmatmul.mubr.msk.bf16.vlgmr.msra.gmra.mxu0 %vm251_vm2, %v3271_v33 }
 0xd65   :  { %2681 = vmatpush3.bf16.msra.mxu0 %v2826_v50  ;;  %2684 = vmatprep.mubr.msk.bf16.mxu0 %vm2884_vm3, %v2883_v41 }
 0xd66   :  { %2682 = vmatprep.subr.bf16.mxu0 %v2883_v41 }
 0xd69   :  { %2683 = vmatpush3.bf16.msra.mxu0 %v2827_v51 }
 0xd6a   :  { %2688 = vmatprep.subr.bf16.mxu0 %v2883_v41 }
 0xd6c   :  { %2685 = vmatmul.mubr.msk.bf16.vlgmr.msra.gmra.mxu0 %vm251_vm2, %v3271_v33 }
 0xd6d   :  { %2690 = vmatprep.mubr.msk.bf16.mxu0 %vm2884_vm3, %v2883_v41 }
 0xe1c   :  { %v1276_v52 = vpop.f32.mrf.mxu0 }
 0xe1d   :  { %v1277_v3 = vadd.f32 %v2345_v61, %v1276_v52 }
 0xe1e   :  { %v2670_v53 = vpop.f32.mrf.mxu0 }
 0xe1f   :  { %v1406_v8 = vpack.c.bf16 %v1277_v3, %v1277_v3  ;;  %v2381_v53 = vld [vmem:[%s3488_s11 + $0x9] ss:$0 sm:$0xff] }
 0xe20   :  { %v1279_v54 = vpop.f32.mrf.mxu0 }
 0xe22   :  { %v2671_v56 = vpop.f32.mrf.mxu0 }
 0xe24   :  { %v1338_v58 = vpop.f32.mrf.mxu0 }
 0xe25   :  { %v1339_v59 = vadd.f32 %v2353_v57, %v1338_v58 }
 0xe26   :  { %v2678_v60 = vpop.f32.mrf.mxu0 }
 0xe27   :  { %v1407_v55 = vpack.c.bf16 %v1339_v59, %v1339_v59  ;;  %v2373_v59 = vld [vmem:[%s3488_s11 + $0x7] ss:$0 sm:$0xff] }
 0xe28   :  { %v1341_v62 = vpop.f32.mrf.mxu0 }
 0xe29   :  { %v1412_v63 = vsel %vm467_vm4, %v1407_v55, 0 }
 0xe2a   :  { %v2679_v0 = vpop.f32.mrf.mxu0  ;;  %2689 = vmatpush3.bf16.xpose.msra.mxu0 %v1412_v63 }
 0xe2b   :  { %2700 = vmatprep.subr.bf16.mxu0 %v2883_v41 }
 0xe2c   :  { %v1400_v4 = vpop.f32.mrf.mxu0 }
 0xe2d   :  { %v1401_v5 = vadd.f32 %v2361_v2, %v1400_v4 }
 0xe2e   :  { %v2686_v6 = vpop.f32.mrf.mxu0 }
 0xe2f   :  { %v1466_v9 = vpack.c.bf16 %v1401_v5, %v1401_v5 }
 0xe30   :  { %v1403_v10 = vpop.f32.mrf.mxu0 }
 0xe31   :  { %v1471_v11 = vsel %vm531_vm5, %v1466_v9, 0  ;;  %2691 = vmatmul.mubr.msk.bf16.vlgmr.msra.gmra.mxu0 %vm467_vm4, %v1406_v8 }
 0xe32   :  { %v2687_v12 = vpop.f32.mrf.mxu0  ;;  %2695 = vmatpush3.bf16.msra.mxu1 %v1471_v11  ;;  %2701 = vmatpush3.bf16.msra.mxu0 %v2828_v7  ;;  %v2835_v11 = vld [vmem:[%s3490_s6 + $0x18] sm:$0xff]  }
 0xe33   :  { %2702 = vmatprep.subr.bf16.mxu0 %v2883_v41  ;;  %2704 = vmatprep.mubr.msk.bf16.mxu0 %vm2884_vm3, %v2883_v41 }
 0xe34   :  { %2708 = vmatprep.subr.bf16.mxu1 %v2883_v41 }
 0xe36   :  { %2703 = vmatpush3.bf16.msra.mxu0 %v2829_v13 }
 0xe37   :  { %2716 = vmatprep.subr.bf16.mxu0 %v2883_v41 }
 0xe39   :  { %2705 = vmatmul.mubr.msk.bf16.vlgmr.msra.gmra.mxu0 %vm251_vm2, %v3271_v33 }
 0xe3a   :  { %2717 = vmatpush3.bf16.msra.mxu0 %v2830_v14  ;;  %2720 = vmatprep.mubr.msk.bf16.mxu0 %vm2884_vm3, %v2883_v41  ;;  %v2834_v14 = vld [vmem:[%s3490_s6 + $0x10] sm:$0xff]  }
 0xe3b   :  { %2718 = vmatprep.subr.bf16.mxu0 %v2883_v41 }
 0xe3e   :  { %2719 = vmatpush3.bf16.msra.mxu0 %v2831_v15 }
 0xe3f   :  { %2730 = vmatprep.subr.bf16.mxu0 %v2883_v41 }
 0xe41   :  { %2721 = vmatmul.mubr.msk.bf16.vlgmr.msra.gmra.mxu0 %vm251_vm2, %v3271_v33 }
 0xe42   :  { %2732 = vmatprep.mubr.msk.bf16.mxu0 %vm2884_vm3, %v2883_v41 }
 0xef1   :  { %v1448_v16 = vpop.f32.mrf.mxu0 }
 0xef2   :  { %v1449_v17 = vadd.f32 %v1448_v16, %v3117_v27 }
 0xef3   :  { %v2692_v18 = vpop.f32.mrf.mxu0 }
 0xef4   :  { %v1454_v19 = vsel %vm514_vm6, %v1449_v17, -inf }
 0xef5   :  { %1455 = vmax.xlane.f32.xlu0 %v1454_v19  ;;  %v1451_v20 = vpop.f32.mrf.mxu0 }
 0xef7   :  { %v2693_v21 = vpop.f32.mrf.mxu0 }
 0xef9   :  { %v1573_v22 = vpop.f32.mrf.mxu0 }
 0xefa   :  { %v1574_v61 = vadd.f32 %v2373_v59, %v1573_v22  ;;  %v2842_v59 = vld [vmem:[%s3492_s8 + $0x58] sm:$0xff]  }
 0xefb   :  { %v2706_v23 = vpop.f32.mrf.mxu0 }
 0xefc   :  { %v1703_v62 = vpack.c.bf16 %v1574_v61, %v1574_v61  ;;  %v2408_v61 = vld [vmem:[%s3493_s12 + $0x1] ss:$0 sm:$0xff] }
 0xefd   :  { %v1576_v24 = vpop.f32.mrf.mxu0 }
 0xeff   :  { %v2707_v26 = vpop.f32.mrf.mxu0 }
 0xf01   :  { %v1697_v29 = vpop.f32.mrf.mxu0 }
 0xf02   :  { %v1698_v30 = vadd.f32 %v2389_v28, %v1697_v29 }
 0xf03   :  { %v2722_v31 = vpop.f32.mrf.mxu0 }
 0xf04   :  { %v1763_v32 = vpack.c.bf16 %v1698_v30, %v1698_v30  ;;  %v2401_v30 = vld [vmem:[%s3485_s10 + $0xc] ss:$0 sm:$0xff] }
 0xf05   :  { %v1700_v34 = vpop.f32.mrf.mxu0 }
 0xf06   :  { %v1768_v35 = vsel %vm531_vm5, %v1763_v32, 0 }
 0xf07   :  { %v2723_v36 = vpop.f32.mrf.mxu0  ;;  %2731 = vmatpush3.bf16.msra.mxu0 %v1768_v35 }
 0xf08   :  { %2742 = vmatprep.subr.bf16.mxu0 %v2883_v41 }
 0xf7e   :  { %v1456_v37 = vpop.xlane.xlu0 %1455 }
 0xf7f   :  { %v1457_v38 = vsub.f32 %v1449_v17, %v1456_v37 }
 0xf81   :  { %v1458_v39 = vmul.f32 1.442695, %v1457_v38 }
 0xf83   :  { %2868 = vpow2.f32 %v1458_v39 }
 0xf90   :  { %v2869_v40 = vpop.eup %2868 }
 0xf91   :  { %v1460_v42 = vsel %vm514_vm6, %v2869_v40, 0.0 }
 0xf92   :  { %1461 = vadd.xlane.f32.xlu1 %v1460_v42 }
0x101b   :  { %v1462_v43 = vpop.xlane.xlu1 %1461 }
0x101c   :  { %2870 = vrcp.f32 %v1462_v43 }
0x1029   :  { %v2871_v44 = vpop.eup %2870 }
0x102a   :  { %v1464_v45 = vmul.f32 %v2871_v44, %v2869_v40  ;;  %v2837_v44 = vld [vmem:[%s3491_s7 + $0x10] sm:$0xff]  }
0x102c   :  { %v1465_v47 = vpack.c.bf16 %v1464_v45, %v1464_v45 }
0x102e   :  { %2697 = vmatmul.mubr.msk.bf16.vlgmr.msra.gmra.mxu1 %vm514_vm6, %v1465_v47 }
0x102f   :  { %2709 = vmatpush3.bf16.msra.mxu1 %v2832_v46  ;;  %2712 = vmatprep.mubr.msk.bf16.mxu1 %vm2884_vm3, %v2883_v41 }
0x1030   :  { %2710 = vmatprep.subr.bf16.mxu1 %v2883_v41 }
0x1033   :  { %2711 = vmatpush3.bf16.msra.mxu1 %v2833_v48 }
0x1034   :  { %2724 = vmatprep.subr.bf16.mxu1 %v2883_v41 }
0x1036   :  { %2713 = vmatmul.mubr.msk.bf16.vlgmr.msra.gmra.mxu1 %vm251_vm2, %v3271_v33 }
0x1037   :  { %2726 = vmatprep.mubr.msk.bf16.mxu1 %vm2884_vm3, %v2883_v41 }
0x10ee   :  { %v1507_v49 = vpop.f32.mrf.mxu1 }
0x10ef   :  { %v1513_v16 = vpack.c.bf16 %v1507_v49, %v1507_v49  ;;  %v2402_v49 = vld [vmem:[%s3485_s10 + $0xd] ss:$0 sm:$0xff] }
0x10f0   :  { %v2698_v50 = vpop.f32.mrf.mxu1 }
0x10f2   :  { %v1510_v51 = vpop.f32.mrf.mxu1 }
0x10f3   :  { %v2403_v51 = vld [vmem:[%s3485_s10 + $0xe] ss:$0 sm:$0xff] }
0x10f4   :  { %v2699_v52 = vpop.f32.mrf.mxu1 }
0x10f6   :  { %v1635_v54 = vpop.f32.mrf.mxu1 }
0x10f7   :  { %v1636_v56 = vadd.f32 %v2381_v53, %v1635_v54 }
0x10f8   :  { %v2714_v57 = vpop.f32.mrf.mxu1 }
0x10f9   :  { %v1704_v58 = vpack.c.bf16 %v1636_v56, %v1636_v56  ;;  %v2838_v56 = vld [vmem:[%s3492_s8 + $0x78] sm:$0xff]   ;;  %v2839_v57 = vld [vmem:[%s3492_s8 + $0x70] sm:$0xff]  }
0x10fa   :  { %v1638_v33 = vpop.f32.mrf.mxu1 }
0x10fb   :  { %v1709_v60 = vsel %vm467_vm4, %v1704_v58, 0  ;;  %v2840_v58 = vld [vmem:[%s3492_s8 + $0x68] sm:$0xff]   ;;  %v2843_v33 = vld [vmem:[%s3492_s8 + $0x50] sm:$0xff]  }
0x10fc   :  { %v2715_v55 = vpop.f32.mrf.mxu1  ;;  %2725 = vmatpush3.bf16.xpose.msra.mxu1 %v1709_v60  ;;  %v2844_v60 = vld [vmem:[%s3492_s8 + $0x48] sm:$0xff]  }
0x10fd   :  { %2736 = vmatprep.subr.bf16.mxu1 %v2883_v41  ;;  %v2845_v55 = vld [vmem:[%s3492_s8 + $0x40] sm:$0xff]  }
0x1103   :  { %2727 = vmatmul.mubr.msk.bf16.vlgmr.msra.gmra.mxu1 %vm467_vm4, %v1703_v62 }
0x1104   :  { %2738 = vmatprep.mubr.msk.bf16.mxu1 %vm2884_vm3, %v2883_v41  ;;  %2737 = vmatpush3.bf16.msra.mxu1 %v2835_v11 }
0x1105   :  { %2748 = vmatprep.subr.bf16.mxu1 %v2883_v41 }
0x11c3   :  { %v1745_v63 = vpop.f32.mrf.mxu1 }
0x11c4   :  { %v1746_v0 = vadd.f32 %v1745_v63, %v3117_v27 }
0x11c5   :  { %v2728_v2 = vpop.f32.mrf.mxu1 }
0x11c6   :  { %v1751_v3 = vsel %vm514_vm6, %v1746_v0, -inf }
0x11c7   :  { %1752 = vmax.xlane.f32.xlu0 %v1751_v3  ;;  %v1748_v4 = vpop.f32.mrf.mxu1 }
0x11c9   :  { %v2729_v5 = vpop.f32.mrf.mxu1 }
0x1250   :  { %v1753_v6 = vpop.xlane.xlu0 %1752 }
0x1251   :  { %v1754_v7 = vsub.f32 %v1746_v0, %v1753_v6 }
0x1253   :  { %v1755_v8 = vmul.f32 1.442695, %v1754_v7 }
0x1255   :  { %2872 = vpow2.f32 %v1755_v8 }
0x1262   :  { %v2873_v9 = vpop.eup %2872 }
0x1263   :  { %v1757_v10 = vsel %vm514_vm6, %v2873_v9, 0.0 }
0x1264   :  { %1758 = vadd.xlane.f32.xlu1 %v1757_v10 }
0x12ed   :  { %v1759_v27 = vpop.xlane.xlu1 %1758 }
0x12ee   :  { %2874 = vrcp.f32 %v1759_v27 }
0x12fb   :  { %v2875_v12 = vpop.eup %2874 }
0x12fc   :  { %v1761_v13 = vmul.f32 %v2875_v12, %v2873_v9 }
0x12fe   :  { %v1762_v15 = vpack.c.bf16 %v1761_v13, %v1761_v13  ;;  %v2436_v13 = vld [vmem:[%s3485_s10 + $0xf] ss:$0 sm:$0xff] }
0x1300   :  { %2733 = vmatmul.mubr.msk.bf16.vlgmr.msra.gmra.mxu0 %vm514_vm6, %v1762_v15 }
0x1301   :  { %2743 = vmatpush3.bf16.msra.mxu0 %v2834_v14  ;;  %2744 = vmatprep.mubr.msk.bf16.mxu0 %vm2884_vm3, %v2883_v41 }
0x1302   :  { %2756 = vmatprep.subr.bf16.mxu0 %v2883_v41 }
0x1308   :  { %2745 = vmatmul.mubr.msk.bf16.vlgmr.msra.gmra.mxu0 %vm467_vm4, %v1513_v16 }
0x1309   :  { %2772 = vmatprep.mubr.msk.bf16.mxu0 %vm2884_vm3, %v2883_v41  ;;  %2757 = vmatpush3.bf16.msra.mxu0 %v2838_v56 }
0x130a   :  { %2758 = vmatprep.subr.bf16.mxu0 %v2883_v41 }
0x130d   :  { %2759 = vmatpush3.bf16.msra.mxu0 %v2839_v57 }
0x130e   :  { %2760 = vmatprep.subr.bf16.mxu0 %v2883_v41 }
0x1311   :  { %2761 = vmatpush3.bf16.msra.mxu0 %v2840_v58 }
0x1312   :  { %2762 = vmatprep.subr.bf16.mxu0 %v2883_v41 }
0x13c0   :  { %v1804_v17 = vpop.f32.mrf.mxu0 }
0x13c1   :  { %v1810_v18 = vpack.c.bf16 %v1804_v17, %v1804_v17 }
0x13c2   :  { %v2734_v19 = vpop.f32.mrf.mxu0 }
0x13c3   :  { %2739 = vmatmul.mubr.msk.bf16.vlgmr.msra.gmra.mxu1 %vm467_vm4, %v1810_v18 }
0x13c4   :  { %v1807_v20 = vpop.f32.mrf.mxu0  ;;  %2752 = vmatprep.mubr.msk.bf16.mxu1 %vm2884_vm3, %v2883_v41 }
0x13c6   :  { %v2735_v21 = vpop.f32.mrf.mxu0 }
0x13c8   :  { %v1906_v22 = vpop.f32.mrf.mxu0 }
0x13ca   :  { %v2746_v23 = vpop.f32.mrf.mxu0 }
0x13cc   :  { %v1909_v24 = vpop.f32.mrf.mxu0 }
0x13ce   :  { %v2747_v26 = vpop.f32.mrf.mxu0 }
0x13cf   :  { %v2848_v26 = vld [vmem:[%s3494_s9 + $0x14] ss:$8 sps:$4 sm:$0xff]  }
0x1483   :  { %v1857_v28 = vpop.f32.mrf.mxu1 }
0x1484   :  { %v1907_v29 = vadd.f32 %v1906_v22, %v1857_v28  ;;  %v2846_v28 = vld [vmem:[%s3494_s9 + $0x10] ss:$8 sps:$4 sm:$0xff]  }
0x1485   :  { %v2740_v31 = vpop.f32.mrf.mxu1 }
0x1486   :  { %v1912_v32 = vadd.f32 %v1907_v29, %v3248_v25  ;;  %v2836_v25 = vld [vmem:[%s3491_s7 + $0x18] sm:$0xff]   ;;  %v2851_v29 = vld [vmem:[%s3494_s9 + $0x4] ss:$8 sps:$4 sm:$0xff]  }
0x1487   :  { %v1860_v34 = vpop.f32.mrf.mxu1  ;;  %2749 = vmatpush3.bf16.msra.mxu1 %v2836_v25 }
0x1488   :  { %v3396_v35 = vadd.f32 %v2401_v30, %v1912_v32  ;;  %2750 = vmatprep.subr.bf16.mxu1 %v2883_v41  ;;  %v2849_v30 = vld [vmem:[%s3494_s9] ss:$8 sps:$4 sm:$0xff]  }
0x1489   :  { %v2741_v36 = vpop.f32.mrf.mxu1 }
0x148a   :  { %v1918_v37 = vsel %vm251_vm2, %v3396_v35, 0.0  ;;  %v2437_v36 = vld [vmem:[%s3485_s10 + $0x2] ss:$0 sm:$0xff] }
0x148b   :  { %1919 = vadd.xlane.f32.xlu0 %v1918_v37  ;;  %2751 = vmatpush3.bf16.msra.mxu1 %v2837_v44 }
0x148c   :  { %2205 = vmatprep.subr.bf16.mxu1 %v2848_v26 }
0x1514   :  { %v1920_v38 = vpop.xlane.xlu0 %1919 }
0x1515   :  { %v1921_v39 = vmul.f32 0.03125, %v1920_v38  ;;  %v2438_v38 = vld [vmem:[%s3485_s10 + $0x3] ss:$0 sm:$0xff] }
0x1517   :  { %v1922_v40 = vsub.f32 %v3396_v35, %v1921_v39 }
0x1519   :  { %v1923_v42 = vmul.f32 %v1922_v40, %v1922_v40 }
0x151b   :  { %v1924_v43 = vsel %vm251_vm2, %v1923_v42, 0.0 }
0x151c   :  { %1925 = vadd.xlane.f32.xlu1 %v1924_v43  ;;  %v2160_v43 = vlaneseq }
0x151e   :  { %v2161_v25 = vshrl.u32 %v2160_v43, 7 }
0x1520   :  { %v2162_v44 = vsub.s32 0, %v2161_v25 }
0x15a5   :  { %v1926_v45 = vpop.xlane.xlu1 %1925 }
0x15a6   :  { %v1927_v46 = vmul.f32 0.03125, %v1926_v45  ;;  %v2166_v45 = vsub.s32 1, %v2161_v25 }
0x15a8   :  { %v1928_v47 = vadd.f32 1e-06, %v1927_v46  ;;  %v2158_v46 = vld [vmem:[%s3495_s13] sm:$0x3] }
0x15aa   :  { %2876 = vrsqrt.f32 %v1928_v47  ;;  %v2163_v47 = vrot.slane %v2158_v46, %v2162_v44 }
0x15b7   :  { %v2877_v48 = vpop.eup %2876 }
0x15b8   :  { %v1930_v50 = vmul.f32 %v2877_v48, %v1922_v40  ;;  %v2167_v48 = vrot.slane %v2158_v46, %v2166_v45 }
0x15ba   :  { %v1935_v52 = vmul.f32 %v2402_v49, %v1930_v50 }
0x15bc   :  { %v1940_v53 = vadd.f32 %v2403_v51, %v1935_v52 }
0x15be   :  { %v1941_v54 = vpack.c.bf16 %v1940_v53, %v1940_v53 }
0x15c0   :  { %2753 = vmatmul.mubr.msk.bf16.vlgmr.msra.gmra.mxu1 %vm251_vm2, %v1941_v54 }
0x15c1   :  { %2225 = vmatprep.mubr.bf16.mxu1 %v2882_v1  ;;  %v2841_v1 = vld [vmem:[%s3492_s8 + $0x60] sm:$0xff]   ;;  %2206 = vmatpush1.bf16.msra.mxu1 %v2846_v28 }
0x15c2   :  { %2763 = vmatpush3.bf16.msra.mxu0 %v2841_v1  ;;  %2207 = vmatprep.subr.bf16.mxu1 %v2851_v29 }
0x15c3   :  { %2764 = vmatprep.subr.bf16.mxu0 %v2883_v41 }
0x15c5   :  { %2208 = vmatpush1.bf16.msra.mxu1 %v2849_v30 }
0x15c6   :  { %2765 = vmatpush3.bf16.msra.mxu0 %v2842_v59 }
0x15c7   :  { %2766 = vmatprep.subr.bf16.mxu0 %v2883_v41 }
0x15ca   :  { %2767 = vmatpush3.bf16.msra.mxu0 %v2843_v33 }
0x15cb   :  { %2768 = vmatprep.subr.bf16.mxu0 %v2883_v41 }
0x15ce   :  { %2769 = vmatpush3.bf16.msra.mxu0 %v2844_v60 }
0x15cf   :  { %2770 = vmatprep.subr.bf16.mxu0 %v2883_v41 }
0x15d2   :  { %2771 = vmatpush3.bf16.msra.mxu0 %v2845_v55 }
0x1680   :  { %v2001_v62 = vpop.f32.mrf.mxu1 }
0x1681   :  { %v2002_v63 = vadd.f32 %v2408_v61, %v2001_v62 }
0x1682   :  { %v2754_v0 = vpop.f32.mrf.mxu1 }
0x1683   :  { %v2007_v2 = vmul.f32 %v2002_v63, %v2002_v63 }
0x1684   :  { %v2004_v3 = vpop.f32.mrf.mxu1 }
0x1685   :  { %v2008_v4 = vmul.f32 %v2007_v2, %v2002_v63 }
0x1686   :  { %v2755_v5 = vpop.f32.mrf.mxu1 }
0x1687   :  { %v2009_v6 = vmul.f32 0.044715, %v2008_v4 }
0x1689   :  { %v2010_v7 = vadd.f32 %v2009_v6, %v2002_v63 }
0x168b   :  { %v2011_v8 = vmul.f32 0.7978846, %v2010_v7 }
0x168d   :  { %2878 = vtanh.f32 %v2011_v8 }
0x169a   :  { %v2879_v9 = vpop.eup %2878 }
0x169b   :  { %v2013_v10 = vadd.f32 1.0, %v2879_v9 }
0x169d   :  { %v2014_v11 = vmul.f32 0.5, %v2013_v10 }
0x169f   :  { %v2015_v41 = vmul.f32 %v2014_v11, %v2002_v63 }
0x16a1   :  { %v2016_v27 = vpack.c.bf16 %v2015_v41, %v2015_v41 }
0x16a3   :  { %2773 = vmatmul.mubr.bf16.vlgmr.msra.gmra.mxu0 %v2016_v27 }
0x1763   :  { %v2116_v12 = vpop.f32.mrf.mxu0 }
0x1764   :  { %v2122_v14 = vadd.f32 %v2116_v12, %v3396_v35 }
0x1765   :  { %v2774_v15 = vpop.f32.mrf.mxu0 }
0x1766   :  { %v2127_v16 = vadd.f32 %v2436_v13, %v2122_v14 }
0x1767   :  { %v2119_v17 = vpop.f32.mrf.mxu0 }
0x1768   :  { %v2130_v18 = vsel %vm251_vm2, %v2127_v16, 0.0 }
0x1769   :  { %2131 = vadd.xlane.f32.xlu0 %v2130_v18  ;;  %v2775_v19 = vpop.f32.mrf.mxu0 }
0x17f2   :  { %v2132_v20 = vpop.xlane.xlu0 %2131 }
0x17f3   :  { %v2133_v21 = vmul.f32 0.03125, %v2132_v20 }
0x17f5   :  { %v2134_v22 = vsub.f32 %v2127_v16, %v2133_v21 }
0x17f7   :  { %v2135_v23 = vmul.f32 %v2134_v22, %v2134_v22 }
0x17f9   :  { %v2136_v24 = vsel %vm251_vm2, %v2135_v23, 0.0 }
0x17fa   :  { %2137 = vadd.xlane.f32.xlu1 %v2136_v24 }
0x1883   :  { %v2138_v31 = vpop.xlane.xlu1 %2137 }
0x1884   :  { %v2139_v32 = vmul.f32 0.03125, %v2138_v31 }
0x1886   :  { %v2140_v34 = vadd.f32 1e-06, %v2139_v32 }
0x1888   :  { %2880 = vrsqrt.f32 %v2140_v34 }
0x1895   :  { %v2881_v35 = vpop.eup %2880 }
0x1896   :  { %v2142_v37 = vmul.f32 %v2881_v35, %v2134_v22 }
0x1898   :  { %v2147_v39 = vmul.f32 %v2437_v36, %v2142_v37 }
0x189a   :  { %v2152_v40 = vadd.f32 %v2438_v38, %v2147_v39 }
0x189c   :  { %v2153_v42 = vpack.c.bf16 %v2152_v40, %v2152_v40 }
0x189e   :  { %2443 = vmatmul.mubr.msk.bf16.vlgmr.msra.gmra.mxu1 %vm251_vm2, %v2153_v42 }
0x195e   :  { %v2227_v49 = vpop.f32.mrf.mxu1 }
0x195f   :  { %v2228_v51 = vadd.f32 %v2227_v49, %v2163_v47 }
0x1960   :  { %v2229_v50 = vpop.f32.mrf.mxu1 }
0x1961   :  { %v2230_v52 = vadd.f32 %v2229_v50, %v2167_v48 }
0x1962   :  { %v2231_v53 = vpop.f32.mrf.mxu1 }
0x1963   :  { %v2445_v54 = vpack.c.bf16 %v2230_v52, %v2228_v51 }
0x1964   :  { %v2232_v56 = vpop.f32.mrf.mxu1 }
0x1965   :  { %2242 = vst [vmem:[%s3496_s14] sm:$0xff] %v2445_v54 }

</bundles_post_ra>
